<compile_context>
chip_gen: v7x
topology: tpu7x:2x2x1
jax: 0.10.0
libtpu: 0.0.40
codegen_flags: <defaults>
</compile_context>

<pallas_src>
import functools

import jax
import jax.numpy as jnp
from jax import lax
from jax.experimental import pallas as pl
from jax.experimental.pallas import tpu as pltpu


# ----------------------------------------------------------------------------
# Pallas kernel (one batch element per grid step)
# ----------------------------------------------------------------------------
def adown_kernel(x_ref, w1_ref, s1_ref, b1_ref, w2_ref, s2_ref, b2_ref,
                 o_ref, p1_ref, p2_ref, *, Hp, Wp, Ch, Cout, Ho, Wo):
    # x_ref : (1, H, W, C1)       input, NHWC
    # w1_ref: (9, Ch, Cout)       3x3 conv weights, tap-major (di*3 + dj)
    # s1/b1 : (1, Cout)           folded BN1 scale / bias
    # w2_ref: (Ch, Cout)          1x1 conv weights
    # s2/b2 : (1, Cout)           folded BN2 scale / bias
    # o_ref : (1, Ho*Wo, 2*Cout)  output (flat spatial x channels, lane-dense)
    # p1_ref: (Hp+2, Wp+2, Ch)    VMEM scratch: zero-padded pooled first half
    # p2_ref: (Hp+2, Wp+2, Ch)    VMEM scratch: (-big)-padded pooled second half

    # --- 1) avg_pool2d(k=2, s=1, p=0) with f32 accumulation -------------------
    x = x_ref[0]                                                 # (H, W, C1)
    pooled = 0.25 * (x[:Hp, :Wp, :].astype(jnp.float32)
                     + x[1:, :Wp, :].astype(jnp.float32)
                     + x[:Hp, 1:, :].astype(jnp.float32)
                     + x[1:, 1:, :].astype(jnp.float32))         # (Hp, Wp, C1)

    # --- 2) channel split + write into padded VMEM scratches ------------------
    p1_ref[...] = jnp.zeros_like(p1_ref)              # zero pad (conv padding)
    p2_ref[...] = jnp.full_like(p2_ref, -1e30)        # "-inf" pad (max-pool)
    p1_ref[1:Hp + 1, 1:Wp + 1, :] = pooled[:, :, :Ch]
    p2_ref[1:Hp + 1, 1:Wp + 1, :] = pooled[:, :, Ch:]

    # --- 3) branch 1: 3x3 / stride-2 conv as 9 tap matmuls + BN + SiLU --------
    acc1 = jnp.zeros((Ho * Wo, Cout), jnp.float32)
    for di in range(3):
        for dj in range(3):
            patch = p1_ref[pl.ds(di, Ho, stride=2), pl.ds(dj, Wo, stride=2), :]
            acc1 = acc1 + jnp.dot(patch.reshape(Ho * Wo, Ch),
                                  w1_ref[di * 3 + dj],
                                  preferred_element_type=jnp.float32)
    y1 = acc1 * s1_ref[...] + b1_ref[...]
    y1 = y1 * jax.nn.sigmoid(y1)                                 # SiLU

    # --- 4) branch 2: 3x3 / stride-2 max-pool + 1x1 conv + BN + SiLU ----------
    m = p2_ref[pl.ds(0, Ho, stride=2), pl.ds(0, Wo, stride=2), :]
    for di in range(3):
        for dj in range(3):
            if di == 0 and dj == 0:
                continue
            m = jnp.maximum(
                m, p2_ref[pl.ds(di, Ho, stride=2), pl.ds(dj, Wo, stride=2), :])
    y2 = jnp.dot(m.reshape(Ho * Wo, Ch), w2_ref[...],
                 preferred_element_type=jnp.float32)
    y2 = y2 * s2_ref[...] + b2_ref[...]
    y2 = y2 * jax.nn.sigmoid(y2)                                 # SiLU

    # --- 5) channel concat + lane-dense store ---------------------------------
    o_ref[0] = jnp.concatenate([y1, y2], axis=-1).astype(o_ref.dtype)


# ----------------------------------------------------------------------------
# Wrapper
# ----------------------------------------------------------------------------
def _fold_bn(gamma, beta, mean, var, eps):
    scale = gamma / jnp.sqrt(var + eps)
    bias = beta - mean * scale
    return (scale.reshape(1, -1).astype(jnp.float32),
            bias.reshape(1, -1).astype(jnp.float32))


def adown_forward(x, w1_oihw, bn1, w2_oihw, bn2, *, eps=1e-5):
    """x: (B, C1, H, W).  w1: (Cout, C1//2, 3, 3).  w2: (Cout, C1//2, 1, 1).
    bn1/bn2 = (gamma, beta, running_mean, running_var), each (Cout,)."""
    B, C1, H, W = x.shape
    Cout = w1_oihw.shape[0]
    Ch = C1 // 2
    Hp, Wp = H - 1, W - 1                    # after avg_pool2d(2, 1, 0)
    Ho = (Hp - 1) // 2 + 1                   # after k=3, s=2, p=1
    Wo = (Wp - 1) // 2 + 1
    C2 = 2 * Cout

    # Layout plumbing: NCHW -> NHWC; weights to tap-major (Cin, Cout); fold BN.
    x_nhwc = jnp.transpose(x, (0, 2, 3, 1))
    w1_t = jnp.transpose(w1_oihw, (2, 3, 1, 0)).reshape(9, Ch, Cout).astype(jnp.float32)
    w2_m = w2_oihw.reshape(Cout, Ch).T.astype(jnp.float32)
    s1, b1 = _fold_bn(*bn1, eps)
    s2, b2 = _fold_bn(*bn2, eps)

    kernel = functools.partial(adown_kernel, Hp=Hp, Wp=Wp, Ch=Ch, Cout=Cout,
                               Ho=Ho, Wo=Wo)

    itemsize = jnp.dtype(x.dtype).itemsize
    cost = pl.CostEstimate(
        flops=B * (5 * Hp * Wp * C1                      # avg pool
                   + 2 * Ho * Wo * 9 * Ch * Cout         # 3x3 conv
                   + 9 * Ho * Wo * Ch                    # max pool
                   + 2 * Ho * Wo * Ch * Cout             # 1x1 conv
                   + 8 * Ho * Wo * C2),                  # BN + SiLU
        transcendentals=B * Ho * Wo * C2,                # sigmoid
        bytes_accessed=(B * H * W * C1 + B * Ho * Wo * C2) * itemsize
                       + (w1_t.size + w2_m.size + 4 * Cout) * 4,
    )

    out = pl.pallas_call(
        kernel,
        out_shape=jax.ShapeDtypeStruct((B, Ho * Wo, C2), x.dtype),
        grid_spec=pltpu.PrefetchScalarGridSpec(
            num_scalar_prefetch=0,
            grid=(B,),
            in_specs=[
                pl.BlockSpec((1, H, W, C1), lambda b: (b, 0, 0, 0)),
                pl.BlockSpec((9, Ch, Cout), lambda b: (0, 0, 0)),
                pl.BlockSpec((1, Cout), lambda b: (0, 0)),
                pl.BlockSpec((1, Cout), lambda b: (0, 0)),
                pl.BlockSpec((Ch, Cout), lambda b: (0, 0)),
                pl.BlockSpec((1, Cout), lambda b: (0, 0)),
                pl.BlockSpec((1, Cout), lambda b: (0, 0)),
            ],
            out_specs=pl.BlockSpec((1, Ho * Wo, C2), lambda b: (b, 0, 0)),
            scratch_shapes=[
                pltpu.VMEM((Hp + 2, Wp + 2, Ch), jnp.float32),
                pltpu.VMEM((Hp + 2, Wp + 2, Ch), jnp.float32),
            ],
        ),
        compiler_params=pltpu.CompilerParams(
            dimension_semantics=("parallel",),
            vmem_limit_bytes=64 * 1024 * 1024,
        ),
        cost_estimate=cost,
    )(x_nhwc, w1_t, s1, b1, w2_m, s2, b2)

    # (B, Ho*Wo, C2) -> (B, C2, Ho, Wo)
    return jnp.transpose(out.reshape(B, Ho, Wo, C2), (0, 3, 1, 2))


# ----------------------------------------------------------------------------
# Pure-JAX reference (matches the PyTorch forward, BN in eval mode)
# ----------------------------------------------------------------------------
def adown_reference(x, w1_oihw, bn1, w2_oihw, bn2, eps=1e-5):
    def bn_silu(y, bn):
        gamma, beta, mean, var = bn
        scale = (gamma / jnp.sqrt(var + eps)).reshape(1, -1, 1, 1)
        bias = (beta - mean * gamma / jnp.sqrt(var + eps)).reshape(1, -1, 1, 1)
        y = y * scale + bias
        return y * jax.nn.sigmoid(y)

    Ch = x.shape[1] // 2
    xp = 0.25 * (x[:, :, :-1, :-1] + x[:, :, 1:, :-1]
                 + x[:, :, :-1, 1:] + x[:, :, 1:, 1:])            # avg_pool2d(2,1,0)
    x1, x2 = xp[:, :Ch], xp[:, Ch:]
    y1 = lax.conv_general_dilated(x1, w1_oihw, (2, 2), ((1, 1), (1, 1)),
                                  dimension_numbers=('NCHW', 'OIHW', 'NCHW'),
                                  precision=lax.Precision.HIGHEST)
    y1 = bn_silu(y1, bn1)
    x2m = lax.reduce_window(x2, -jnp.inf, lax.max, (1, 1, 3, 3), (1, 1, 2, 2),
                            ((0, 0), (0, 0), (1, 1), (1, 1)))     # max_pool2d(3,2,1)
    y2 = lax.conv_general_dilated(x2m, w2_oihw, (1, 1), ((0, 0), (0, 0)),
                                  dimension_numbers=('NCHW', 'OIHW', 'NCHW'),
                                  precision=lax.Precision.HIGHEST)
    y2 = bn_silu(y2, bn2)
    return jnp.concatenate([y1, y2], axis=1)


if __name__ == "__main__":
    key = jax.random.PRNGKey(0)
    ks = jax.random.split(key, 11)

    B, C1, H, W = 2, 4, 16, 16          # small ADown: c1=4, c2=8
    C2 = 8
    Cout = C2 // 2                       # per-branch output channels
    Ch = C1 // 2                         # per-branch input channels

    x = jax.random.normal(ks[0], (B, C1, H, W), dtype=jnp.float32)

    # Conv weights (PyTorch default init bound ~ 1/sqrt(fan_in)).
    b1w = 1.0 / (Ch * 9) ** 0.5
    w1 = jax.random.uniform(ks[1], (Cout, Ch, 3, 3), jnp.float32, -b1w, b1w)
    b2w = 1.0 / (Ch * 1) ** 0.5
    w2 = jax.random.uniform(ks[2], (Cout, Ch, 1, 1), jnp.float32, -b2w, b2w)

    # BatchNorm (eval mode) params: gamma, beta, running_mean, running_var.
    bn1 = (jax.random.uniform(ks[3], (Cout,), jnp.float32, 0.5, 1.5),
           0.1 * jax.random.normal(ks[4], (Cout,), jnp.float32),
           0.1 * jax.random.normal(ks[5], (Cout,), jnp.float32),
           jax.random.uniform(ks[6], (Cout,), jnp.float32, 0.5, 1.5))
    bn2 = (jax.random.uniform(ks[7], (Cout,), jnp.float32, 0.5, 1.5),
           0.1 * jax.random.normal(ks[8], (Cout,), jnp.float32),
           0.1 * jax.random.normal(ks[9], (Cout,), jnp.float32),
           jax.random.uniform(ks[10], (Cout,), jnp.float32, 0.5, 1.5))

    out = adown_forward(x, w1, bn1, w2, bn2)
    out = jax.block_until_ready(out)

    ref = adown_reference(x, w1, bn1, w2, bn2)
    assert out.shape == ref.shape == (B, C2, 8, 8), (out.shape, ref.shape)
    assert out.dtype == x.dtype
    # Tolerance covers MXU f32-pass behaviour vs. the XLA reference conv.
    assert jnp.allclose(out, ref, atol=1e-3, rtol=1e-3), float(
        jnp.max(jnp.abs(out - ref)))

    print("KERNEL_OK")
</pallas_src>

<mosaic_0001>
module attributes {stable_mosaic.version = 11 : i64} {
  func.func @adown_kernel(%arg0: i32, %arg1: memref<1x16x16x4xf32, #tpu.memory_space<vmem>>, %arg2: memref<9x2x4xf32, #tpu.memory_space<vmem>>, %arg3: memref<1x4xf32, #tpu.memory_space<vmem>>, %arg4: memref<1x4xf32, #tpu.memory_space<vmem>>, %arg5: memref<2x4xf32, #tpu.memory_space<vmem>>, %arg6: memref<1x4xf32, #tpu.memory_space<vmem>>, %arg7: memref<1x4xf32, #tpu.memory_space<vmem>>, %arg8: memref<1x64x8xf32, #tpu.memory_space<vmem>>, %arg9: memref<17x17x2xf32, #tpu.memory_space<vmem>>, %arg10: memref<17x17x2xf32, #tpu.memory_space<vmem>>) attributes {dimension_semantics = [#tpu.dimension_semantics<parallel>], iteration_bounds = array<i64: 2>, scalar_prefetch = 0 : i64, scratch_operands = 2 : i64, tpu.core_type = #tpu.core_type<tc>, window_params = [{transform_indices = @transform_0, window_bounds = array<i64: 1, 16, 16, 4>}, {pipeline_mode = #tpu.pipeline_mode<synchronous>, transform_indices = @transform_1, window_bounds = array<i64: 9, 2, 4>}, {pipeline_mode = #tpu.pipeline_mode<synchronous>, transform_indices = @transform_2, window_bounds = array<i64: 1, 4>}, {pipeline_mode = #tpu.pipeline_mode<synchronous>, transform_indices = @transform_3, window_bounds = array<i64: 1, 4>}, {pipeline_mode = #tpu.pipeline_mode<synchronous>, transform_indices = @transform_4, window_bounds = array<i64: 2, 4>}, {pipeline_mode = #tpu.pipeline_mode<synchronous>, transform_indices = @transform_5, window_bounds = array<i64: 1, 4>}, {pipeline_mode = #tpu.pipeline_mode<synchronous>, transform_indices = @transform_6, window_bounds = array<i64: 1, 4>}, {transform_indices = @transform_7, window_bounds = array<i64: 1, 64, 8>}]} {
    %c0 = arith.constant 0 : index
    %c0_0 = arith.constant 0 : index
    %c0_1 = arith.constant 0 : index
    %c0_2 = arith.constant 0 : index
    %0 = vector.load %arg1[%c0, %c0_0, %c0_1, %c0_2] : memref<1x16x16x4xf32, #tpu.memory_space<vmem>>, vector<1x16x16x4xf32>
    %1 = vector.shape_cast %0 : vector<1x16x16x4xf32> to vector<16x16x4xf32>
    %2 = vector.extract_strided_slice %1 {offsets = [0, 0, 0], sizes = [15, 15, 4], strides = [1, 1, 1]} : vector<16x16x4xf32> to vector<15x15x4xf32>
    %3 = vector.extract_strided_slice %1 {offsets = [1, 0, 0], sizes = [15, 15, 4], strides = [1, 1, 1]} : vector<16x16x4xf32> to vector<15x15x4xf32>
    %4 = arith.addf %2, %3 : vector<15x15x4xf32>
    %5 = vector.extract_strided_slice %1 {offsets = [0, 1, 0], sizes = [15, 15, 4], strides = [1, 1, 1]} : vector<16x16x4xf32> to vector<15x15x4xf32>
    %6 = arith.addf %4, %5 : vector<15x15x4xf32>
    %7 = vector.extract_strided_slice %1 {offsets = [1, 1, 0], sizes = [15, 15, 4], strides = [1, 1, 1]} : vector<16x16x4xf32> to vector<15x15x4xf32>
    %8 = arith.addf %6, %7 : vector<15x15x4xf32>
    %cst = arith.constant 2.500000e-01 : f32
    %9 = vector.broadcast %cst : f32 to vector<15x15x4xf32>
    %10 = arith.mulf %9, %8 : vector<15x15x4xf32>
    %cst_3 = arith.constant 0.000000e+00 : f32
    %11 = vector.broadcast %cst_3 : f32 to vector<17x17x2xf32>
    %c0_4 = arith.constant 0 : index
    %c0_5 = arith.constant 0 : index
    %c0_6 = arith.constant 0 : index
    %12 = vector.load %arg9[%c0_4, %c0_5, %c0_6] : memref<17x17x2xf32, #tpu.memory_space<vmem>>, vector<17x17x2xf32>
    tpu.vector_store %arg9[%c0_4, %c0_5, %c0_6], %11 {strides = array<i32>} : memref<17x17x2xf32, #tpu.memory_space<vmem>>, vector<17x17x2xf32>,
    %cst_7 = arith.constant -1.000000e+30 : f32
    %13 = vector.broadcast %cst_7 : f32 to vector<17x17x2xf32>
    %c0_8 = arith.constant 0 : index
    %c0_9 = arith.constant 0 : index
    %c0_10 = arith.constant 0 : index
    %14 = vector.load %arg10[%c0_8, %c0_9, %c0_10] : memref<17x17x2xf32, #tpu.memory_space<vmem>>, vector<17x17x2xf32>
    tpu.vector_store %arg10[%c0_8, %c0_9, %c0_10], %13 {strides = array<i32>} : memref<17x17x2xf32, #tpu.memory_space<vmem>>, vector<17x17x2xf32>,
    %15 = vector.extract_strided_slice %10 {offsets = [0, 0, 0], sizes = [15, 15, 2], strides = [1, 1, 1]} : vector<15x15x4xf32> to vector<15x15x2xf32>
    %c1 = arith.constant 1 : index
    %c1_11 = arith.constant 1 : index
    %c0_12 = arith.constant 0 : index
    %16 = vector.load %arg9[%c1, %c1_11, %c0_12] : memref<17x17x2xf32, #tpu.memory_space<vmem>>, vector<15x15x2xf32>
    tpu.vector_store %arg9[%c1, %c1_11, %c0_12], %15 {strides = array<i32>} : memref<17x17x2xf32, #tpu.memory_space<vmem>>, vector<15x15x2xf32>,
    %17 = vector.extract_strided_slice %10 {offsets = [0, 0, 2], sizes = [15, 15, 2], strides = [1, 1, 1]} : vector<15x15x4xf32> to vector<15x15x2xf32>
    %c1_13 = arith.constant 1 : index
    %c1_14 = arith.constant 1 : index
    %c0_15 = arith.constant 0 : index
    %18 = vector.load %arg10[%c1_13, %c1_14, %c0_15] : memref<17x17x2xf32, #tpu.memory_space<vmem>>, vector<15x15x2xf32>
    tpu.vector_store %arg10[%c1_13, %c1_14, %c0_15], %17 {strides = array<i32>} : memref<17x17x2xf32, #tpu.memory_space<vmem>>, vector<15x15x2xf32>,
    %cst_16 = arith.constant 0.000000e+00 : f32
    %19 = vector.broadcast %cst_16 : f32 to vector<64x4xf32>
    %c0_17 = arith.constant 0 : index
    %c0_18 = arith.constant 0 : index
    %c0_19 = arith.constant 0 : index
    %20 = tpu.strided_load %arg9[%c0_17, %c0_18, %c0_19] {strides = array<i32: 2, 2, 1>} : memref<17x17x2xf32, #tpu.memory_space<vmem>>, vector<8x8x2xf32>
    %21 = vector.shape_cast %20 : vector<8x8x2xf32> to vector<64x2xf32>
    %c0_20 = arith.constant 0 : index
    %c0_21 = arith.constant 0 : index
    %c0_22 = arith.constant 0 : index
    %22 = vector.load %arg2[%c0_20, %c0_21, %c0_22] : memref<9x2x4xf32, #tpu.memory_space<vmem>>, vector<1x2x4xf32>
    %23 = vector.shape_cast %22 : vector<1x2x4xf32> to vector<2x4xf32>
    %cst_23 = arith.constant dense<0.000000e+00> : vector<64x4xf32>
    %24 = tpu.matmul %21, %23, %cst_23 {dimension_numbers = #tpu.dot_dimension_numbers<[1], [0], [0], [1], [0, 0, 1, 1], [], []>} : vector<64x2xf32>, vector<2x4xf32>, vector<64x4xf32> -> vector<64x4xf32>
    %25 = arith.addf %19, %24 : vector<64x4xf32>
    %c0_24 = arith.constant 0 : index
    %c1_25 = arith.constant 1 : index
    %c0_26 = arith.constant 0 : index
    %26 = tpu.strided_load %arg9[%c0_24, %c1_25, %c0_26] {strides = array<i32: 2, 2, 1>} : memref<17x17x2xf32, #tpu.memory_space<vmem>>, vector<8x8x2xf32>
    %27 = vector.shape_cast %26 : vector<8x8x2xf32> to vector<64x2xf32>
    %c1_27 = arith.constant 1 : index
    %c0_28 = arith.constant 0 : index
    %c0_29 = arith.constant 0 : index
    %28 = vector.load %arg2[%c1_27, %c0_28, %c0_29] : memref<9x2x4xf32, #tpu.memory_space<vmem>>, vector<1x2x4xf32>
    %29 = vector.shape_cast %28 : vector<1x2x4xf32> to vector<2x4xf32>
    %cst_30 = arith.constant dense<0.000000e+00> : vector<64x4xf32>
    %30 = tpu.matmul %27, %29, %cst_30 {dimension_numbers = #tpu.dot_dimension_numbers<[1], [0], [0], [1], [0, 0, 1, 1], [], []>} : vector<64x2xf32>, vector<2x4xf32>, vector<64x4xf32> -> vector<64x4xf32>
    %31 = arith.addf %25, %30 : vector<64x4xf32>
    %c0_31 = arith.constant 0 : index
    %c2 = arith.constant 2 : index
    %c0_32 = arith.constant 0 : index
    %32 = tpu.strided_load %arg9[%c0_31, %c2, %c0_32] {strides = array<i32: 2, 2, 1>} : memref<17x17x2xf32, #tpu.memory_space<vmem>>, vector<8x8x2xf32>
    %33 = vector.shape_cast %32 : vector<8x8x2xf32> to vector<64x2xf32>
    %c2_33 = arith.constant 2 : index
    %c0_34 = arith.constant 0 : index
    %c0_35 = arith.constant 0 : index
    %34 = vector.load %arg2[%c2_33, %c0_34, %c0_35] : memref<9x2x4xf32, #tpu.memory_space<vmem>>, vector<1x2x4xf32>
    %35 = vector.shape_cast %34 : vector<1x2x4xf32> to vector<2x4xf32>
    %cst_36 = arith.constant dense<0.000000e+00> : vector<64x4xf32>
    %36 = tpu.matmul %33, %35, %cst_36 {dimension_numbers = #tpu.dot_dimension_numbers<[1], [0], [0], [1], [0, 0, 1, 1], [], []>} : vector<64x2xf32>, vector<2x4xf32>, vector<64x4xf32> -> vector<64x4xf32>
    %37 = arith.addf %31, %36 : vector<64x4xf32>
    %c1_37 = arith.constant 1 : index
    %c0_38 = arith.constant 0 : index
    %c0_39 = arith.constant 0 : index
    %38 = tpu.strided_load %arg9[%c1_37, %c0_38, %c0_39] {strides = array<i32: 2, 2, 1>} : memref<17x17x2xf32, #tpu.memory_space<vmem>>, vector<8x8x2xf32>
    %39 = vector.shape_cast %38 : vector<8x8x2xf32> to vector<64x2xf32>
    %c3 = arith.constant 3 : index
    %c0_40 = arith.constant 0 : index
    %c0_41 = arith.constant 0 : index
    %40 = vector.load %arg2[%c3, %c0_40, %c0_41] : memref<9x2x4xf32, #tpu.memory_space<vmem>>, vector<1x2x4xf32>
    %41 = vector.shape_cast %40 : vector<1x2x4xf32> to vector<2x4xf32>
    %cst_42 = arith.constant dense<0.000000e+00> : vector<64x4xf32>
    %42 = tpu.matmul %39, %41, %cst_42 {dimension_numbers = #tpu.dot_dimension_numbers<[1], [0], [0], [1], [0, 0, 1, 1], [], []>} : vector<64x2xf32>, vector<2x4xf32>, vector<64x4xf32> -> vector<64x4xf32>
    %43 = arith.addf %37, %42 : vector<64x4xf32>
    %c1_43 = arith.constant 1 : index
    %c1_44 = arith.constant 1 : index
    %c0_45 = arith.constant 0 : index
    %44 = tpu.strided_load %arg9[%c1_43, %c1_44, %c0_45] {strides = array<i32: 2, 2, 1>} : memref<17x17x2xf32, #tpu.memory_space<vmem>>, vector<8x8x2xf32>
    %45 = vector.shape_cast %44 : vector<8x8x2xf32> to vector<64x2xf32>
    %c4 = arith.constant 4 : index
    %c0_46 = arith.constant 0 : index
    %c0_47 = arith.constant 0 : index
    %46 = vector.load %arg2[%c4, %c0_46, %c0_47] : memref<9x2x4xf32, #tpu.memory_space<vmem>>, vector<1x2x4xf32>
    %47 = vector.shape_cast %46 : vector<1x2x4xf32> to vector<2x4xf32>
    %cst_48 = arith.constant dense<0.000000e+00> : vector<64x4xf32>
    %48 = tpu.matmul %45, %47, %cst_48 {dimension_numbers = #tpu.dot_dimension_numbers<[1], [0], [0], [1], [0, 0, 1, 1], [], []>} : vector<64x2xf32>, vector<2x4xf32>, vector<64x4xf32> -> vector<64x4xf32>
    %49 = arith.addf %43, %48 : vector<64x4xf32>
    %c1_49 = arith.constant 1 : index
    %c2_50 = arith.constant 2 : index
    %c0_51 = arith.constant 0 : index
    %50 = tpu.strided_load %arg9[%c1_49, %c2_50, %c0_51] {strides = array<i32: 2, 2, 1>} : memref<17x17x2xf32, #tpu.memory_space<vmem>>, vector<8x8x2xf32>
    %51 = vector.shape_cast %50 : vector<8x8x2xf32> to vector<64x2xf32>
    %c5 = arith.constant 5 : index
    %c0_52 = arith.constant 0 : index
    %c0_53 = arith.constant 0 : index
    %52 = vector.load %arg2[%c5, %c0_52, %c0_53] : memref<9x2x4xf32, #tpu.memory_space<vmem>>, vector<1x2x4xf32>
    %53 = vector.shape_cast %52 : vector<1x2x4xf32> to vector<2x4xf32>
    %cst_54 = arith.constant dense<0.000000e+00> : vector<64x4xf32>
    %54 = tpu.matmul %51, %53, %cst_54 {dimension_numbers = #tpu.dot_dimension_numbers<[1], [0], [0], [1], [0, 0, 1, 1], [], []>} : vector<64x2xf32>, vector<2x4xf32>, vector<64x4xf32> -> vector<64x4xf32>
    %55 = arith.addf %49, %54 : vector<64x4xf32>
    %c2_55 = arith.constant 2 : index
    %c0_56 = arith.constant 0 : index
    %c0_57 = arith.constant 0 : index
    %56 = tpu.strided_load %arg9[%c2_55, %c0_56, %c0_57] {strides = array<i32: 2, 2, 1>} : memref<17x17x2xf32, #tpu.memory_space<vmem>>, vector<8x8x2xf32>
    %57 = vector.shape_cast %56 : vector<8x8x2xf32> to vector<64x2xf32>
    %c6 = arith.constant 6 : index
    %c0_58 = arith.constant 0 : index
    %c0_59 = arith.constant 0 : index
    %58 = vector.load %arg2[%c6, %c0_58, %c0_59] : memref<9x2x4xf32, #tpu.memory_space<vmem>>, vector<1x2x4xf32>
    %59 = vector.shape_cast %58 : vector<1x2x4xf32> to vector<2x4xf32>
    %cst_60 = arith.constant dense<0.000000e+00> : vector<64x4xf32>
    %60 = tpu.matmul %57, %59, %cst_60 {dimension_numbers = #tpu.dot_dimension_numbers<[1], [0], [0], [1], [0, 0, 1, 1], [], []>} : vector<64x2xf32>, vector<2x4xf32>, vector<64x4xf32> -> vector<64x4xf32>
    %61 = arith.addf %55, %60 : vector<64x4xf32>
    %c2_61 = arith.constant 2 : index
    %c1_62 = arith.constant 1 : index
    %c0_63 = arith.constant 0 : index
    %62 = tpu.strided_load %arg9[%c2_61, %c1_62, %c0_63] {strides = array<i32: 2, 2, 1>} : memref<17x17x2xf32, #tpu.memory_space<vmem>>, vector<8x8x2xf32>
    %63 = vector.shape_cast %62 : vector<8x8x2xf32> to vector<64x2xf32>
    %c7 = arith.constant 7 : index
    %c0_64 = arith.constant 0 : index
    %c0_65 = arith.constant 0 : index
    %64 = vector.load %arg2[%c7, %c0_64, %c0_65] : memref<9x2x4xf32, #tpu.memory_space<vmem>>, vector<1x2x4xf32>
    %65 = vector.shape_cast %64 : vector<1x2x4xf32> to vector<2x4xf32>
    %cst_66 = arith.constant dense<0.000000e+00> : vector<64x4xf32>
    %66 = tpu.matmul %63, %65, %cst_66 {dimension_numbers = #tpu.dot_dimension_numbers<[1], [0], [0], [1], [0, 0, 1, 1], [], []>} : vector<64x2xf32>, vector<2x4xf32>, vector<64x4xf32> -> vector<64x4xf32>
    %67 = arith.addf %61, %66 : vector<64x4xf32>
    %c2_67 = arith.constant 2 : index
    %c2_68 = arith.constant 2 : index
    %c0_69 = arith.constant 0 : index
    %68 = tpu.strided_load %arg9[%c2_67, %c2_68, %c0_69] {strides = array<i32: 2, 2, 1>} : memref<17x17x2xf32, #tpu.memory_space<vmem>>, vector<8x8x2xf32>
    %69 = vector.shape_cast %68 : vector<8x8x2xf32> to vector<64x2xf32>
    %c8 = arith.constant 8 : index
    %c0_70 = arith.constant 0 : index
    %c0_71 = arith.constant 0 : index
    %70 = vector.load %arg2[%c8, %c0_70, %c0_71] : memref<9x2x4xf32, #tpu.memory_space<vmem>>, vector<1x2x4xf32>
    %71 = vector.shape_cast %70 : vector<1x2x4xf32> to vector<2x4xf32>
    %cst_72 = arith.constant dense<0.000000e+00> : vector<64x4xf32>
    %72 = tpu.matmul %69, %71, %cst_72 {dimension_numbers = #tpu.dot_dimension_numbers<[1], [0], [0], [1], [0, 0, 1, 1], [], []>} : vector<64x2xf32>, vector<2x4xf32>, vector<64x4xf32> -> vector<64x4xf32>
    %73 = arith.addf %67, %72 : vector<64x4xf32>
    %c0_73 = arith.constant 0 : index
    %c0_74 = arith.constant 0 : index
    %74 = vector.load %arg3[%c0_73, %c0_74] : memref<1x4xf32, #tpu.memory_space<vmem>>, vector<1x4xf32>
    %75 = vector.broadcast %74 : vector<1x4xf32> to vector<64x4xf32>
    %76 = arith.mulf %73, %75 : vector<64x4xf32>
    %c0_75 = arith.constant 0 : index
    %c0_76 = arith.constant 0 : index
    %77 = vector.load %arg4[%c0_75, %c0_76] : memref<1x4xf32, #tpu.memory_space<vmem>>, vector<1x4xf32>
    %78 = vector.broadcast %77 : vector<1x4xf32> to vector<64x4xf32>
    %79 = arith.addf %76, %78 : vector<64x4xf32>
    %80 = arith.negf %79 : vector<64x4xf32>
    %81 = math.exp %80 : vector<64x4xf32>
    %cst_77 = arith.constant 1.000000e+00 : f32
    %82 = vector.broadcast %cst_77 : f32 to vector<64x4xf32>
    %83 = arith.addf %82, %81 : vector<64x4xf32>
    %84 = arith.divf %82, %83 : vector<64x4xf32>
    %85 = arith.mulf %79, %84 : vector<64x4xf32>
    %c0_78 = arith.constant 0 : index
    %c0_79 = arith.constant 0 : index
    %c0_80 = arith.constant 0 : index
    %86 = tpu.strided_load %arg10[%c0_78, %c0_79, %c0_80] {strides = array<i32: 2, 2, 1>} : memref<17x17x2xf32, #tpu.memory_space<vmem>>, vector<8x8x2xf32>
    %c0_81 = arith.constant 0 : index
    %c1_82 = arith.constant 1 : index
    %c0_83 = arith.constant 0 : index
    %87 = tpu.strided_load %arg10[%c0_81, %c1_82, %c0_83] {strides = array<i32: 2, 2, 1>} : memref<17x17x2xf32, #tpu.memory_space<vmem>>, vector<8x8x2xf32>
    %88 = arith.maximumf %86, %87 : vector<8x8x2xf32>
    %c0_84 = arith.constant 0 : index
    %c2_85 = arith.constant 2 : index
    %c0_86 = arith.constant 0 : index
    %89 = tpu.strided_load %arg10[%c0_84, %c2_85, %c0_86] {strides = array<i32: 2, 2, 1>} : memref<17x17x2xf32, #tpu.memory_space<vmem>>, vector<8x8x2xf32>
    %90 = arith.maximumf %88, %89 : vector<8x8x2xf32>
    %c1_87 = arith.constant 1 : index
    %c0_88 = arith.constant 0 : index
    %c0_89 = arith.constant 0 : index
    %91 = tpu.strided_load %arg10[%c1_87, %c0_88, %c0_89] {strides = array<i32: 2, 2, 1>} : memref<17x17x2xf32, #tpu.memory_space<vmem>>, vector<8x8x2xf32>
    %92 = arith.maximumf %90, %91 : vector<8x8x2xf32>
    %c1_90 = arith.constant 1 : index
    %c1_91 = arith.constant 1 : index
    %c0_92 = arith.constant 0 : index
    %93 = tpu.strided_load %arg10[%c1_90, %c1_91, %c0_92] {strides = array<i32: 2, 2, 1>} : memref<17x17x2xf32, #tpu.memory_space<vmem>>, vector<8x8x2xf32>
    %94 = arith.maximumf %92, %93 : vector<8x8x2xf32>
    %c1_93 = arith.constant 1 : index
    %c2_94 = arith.constant 2 : index
    %c0_95 = arith.constant 0 : index
    %95 = tpu.strided_load %arg10[%c1_93, %c2_94, %c0_95] {strides = array<i32: 2, 2, 1>} : memref<17x17x2xf32, #tpu.memory_space<vmem>>, vector<8x8x2xf32>
    %96 = arith.maximumf %94, %95 : vector<8x8x2xf32>
    %c2_96 = arith.constant 2 : index
    %c0_97 = arith.constant 0 : index
    %c0_98 = arith.constant 0 : index
    %97 = tpu.strided_load %arg10[%c2_96, %c0_97, %c0_98] {strides = array<i32: 2, 2, 1>} : memref<17x17x2xf32, #tpu.memory_space<vmem>>, vector<8x8x2xf32>
    %98 = arith.maximumf %96, %97 : vector<8x8x2xf32>
    %c2_99 = arith.constant 2 : index
    %c1_100 = arith.constant 1 : index
    %c0_101 = arith.constant 0 : index
    %99 = tpu.strided_load %arg10[%c2_99, %c1_100, %c0_101] {strides = array<i32: 2, 2, 1>} : memref<17x17x2xf32, #tpu.memory_space<vmem>>, vector<8x8x2xf32>
    %100 = arith.maximumf %98, %99 : vector<8x8x2xf32>
    %c2_102 = arith.constant 2 : index
    %c2_103 = arith.constant 2 : index
    %c0_104 = arith.constant 0 : index
    %101 = tpu.strided_load %arg10[%c2_102, %c2_103, %c0_104] {strides = array<i32: 2, 2, 1>} : memref<17x17x2xf32, #tpu.memory_space<vmem>>, vector<8x8x2xf32>
    %102 = arith.maximumf %100, %101 : vector<8x8x2xf32>
    %103 = vector.shape_cast %102 : vector<8x8x2xf32> to vector<64x2xf32>
    %c0_105 = arith.constant 0 : index
    %c0_106 = arith.constant 0 : index
    %104 = vector.load %arg5[%c0_105, %c0_106] : memref<2x4xf32, #tpu.memory_space<vmem>>, vector<2x4xf32>
    %cst_107 = arith.constant dense<0.000000e+00> : vector<64x4xf32>
    %105 = tpu.matmul %103, %104, %cst_107 {dimension_numbers = #tpu.dot_dimension_numbers<[1], [0], [0], [1], [0, 0, 1, 1], [], []>} : vector<64x2xf32>, vector<2x4xf32>, vector<64x4xf32> -> vector<64x4xf32>
    %c0_108 = arith.constant 0 : index
    %c0_109 = arith.constant 0 : index
    %106 = vector.load %arg6[%c0_108, %c0_109] : memref<1x4xf32, #tpu.memory_space<vmem>>, vector<1x4xf32>
    %107 = vector.broadcast %106 : vector<1x4xf32> to vector<64x4xf32>
    %108 = arith.mulf %105, %107 : vector<64x4xf32>
    %c0_110 = arith.constant 0 : index
    %c0_111 = arith.constant 0 : index
    %109 = vector.load %arg7[%c0_110, %c0_111] : memref<1x4xf32, #tpu.memory_space<vmem>>, vector<1x4xf32>
    %110 = vector.broadcast %109 : vector<1x4xf32> to vector<64x4xf32>
    %111 = arith.addf %108, %110 : vector<64x4xf32>
    %112 = arith.negf %111 : vector<64x4xf32>
    %113 = math.exp %112 : vector<64x4xf32>
    %cst_112 = arith.constant 1.000000e+00 : f32
    %114 = vector.broadcast %cst_112 : f32 to vector<64x4xf32>
    %115 = arith.addf %114, %113 : vector<64x4xf32>
    %116 = arith.divf %114, %115 : vector<64x4xf32>
    %117 = arith.mulf %111, %116 : vector<64x4xf32>
    %118 = tpu.concatenate %85, %117 in 1 : vector<64x4xf32>, vector<64x4xf32> -> vector<64x8xf32>
    %c0_113 = arith.constant 0 : index
    %c0_114 = arith.constant 0 : index
    %c0_115 = arith.constant 0 : index
    %119 = vector.load %arg8[%c0_113, %c0_114, %c0_115] : memref<1x64x8xf32, #tpu.memory_space<vmem>>, vector<1x64x8xf32>
    %120 = vector.shape_cast %119 : vector<1x64x8xf32> to vector<64x8xf32>
    %121 = vector.shape_cast %118 : vector<64x8xf32> to vector<1x64x8xf32>
    tpu.vector_store %arg8[%c0_113, %c0_114, %c0_115], %121 {strides = array<i32>} : memref<1x64x8xf32, #tpu.memory_space<vmem>>, vector<1x64x8xf32>,
    return
  }
  func.func @transform_0(%arg0: i32) -> (i32, i32, i32, i32) {
    %c0_i32 = arith.constant 0 : i32
    %c0_i32_0 = arith.constant 0 : i32
    %c0_i32_1 = arith.constant 0 : i32
    %c0_i32_2 = arith.constant 0 : i32
    return %arg0, %c0_i32, %c0_i32_0, %c0_i32_1 : i32, i32, i32, i32
  }
  func.func @transform_1(%arg0: i32) -> (i32, i32, i32) {
    %c0_i32 = arith.constant 0 : i32
    %c0_i32_0 = arith.constant 0 : i32
    %c0_i32_1 = arith.constant 0 : i32
    %c0_i32_2 = arith.constant 0 : i32
    return %c0_i32, %c0_i32_0, %c0_i32_1 : i32, i32, i32
  }
  func.func @transform_2(%arg0: i32) -> (i32, i32) {
    %c0_i32 = arith.constant 0 : i32
    %c0_i32_0 = arith.constant 0 : i32
    %c0_i32_1 = arith.constant 0 : i32
    return %c0_i32, %c0_i32_0 : i32, i32
  }
  func.func @transform_3(%arg0: i32) -> (i32, i32) {
    %c0_i32 = arith.constant 0 : i32
    %c0_i32_0 = arith.constant 0 : i32
    %c0_i32_1 = arith.constant 0 : i32
    return %c0_i32, %c0_i32_0 : i32, i32
  }
  func.func @transform_4(%arg0: i32) -> (i32, i32) {
    %c0_i32 = arith.constant 0 : i32
    %c0_i32_0 = arith.constant 0 : i32
    %c0_i32_1 = arith.constant 0 : i32
    return %c0_i32, %c0_i32_0 : i32, i32
  }
  func.func @transform_5(%arg0: i32) -> (i32, i32) {
    %c0_i32 = arith.constant 0 : i32
    %c0_i32_0 = arith.constant 0 : i32
    %c0_i32_1 = arith.constant 0 : i32
    return %c0_i32, %c0_i32_0 : i32, i32
  }
  func.func @transform_6(%arg0: i32) -> (i32, i32) {
    %c0_i32 = arith.constant 0 : i32
    %c0_i32_0 = arith.constant 0 : i32
    %c0_i32_1 = arith.constant 0 : i32
    return %c0_i32, %c0_i32_0 : i32, i32
  }
  func.func @transform_7(%arg0: i32) -> (i32, i32, i32) {
    %c0_i32 = arith.constant 0 : i32
    %c0_i32_0 = arith.constant 0 : i32
    %c0_i32_1 = arith.constant 0 : i32
    return %arg0, %c0_i32, %c0_i32_0 : i32, i32, i32
  }
}

</mosaic_0001>

<bundles_post_ra>
// kernel: tpu_custom_call.1
= control target key start
LH: loop header
LB: loop body
LE: loop exit
PB: predicated region body
PF: predicated region fallthrough
CT: control target
= control target key end

     0   :  { %12 = vsyncpa [#allocation5], 0  ;;  %s4972_s0 = inlined_call_operand.hbm [shape: f32[2,16,16,4], index: 0, kind: input, shape index: {}]   ;;  %s4973_s1 = inlined_call_operand.hbm [shape: f32[9,2,4], index: 1, kind: input, shape index: {}]   ;;  %s4974_s2 = inlined_call_operand.hbm [shape: f32[1,4], index: 2, kind: input, shape index: {}]   ;;  %s4975_s3 = inlined_call_operand.hbm [shape: f32[1,4], index: 3, kind: input, shape index: {}]   ;;  %s4976_s4 = inlined_call_operand.hbm [shape: f32[2,4], index: 4, kind: input, shape index: {}]   ;;  %s4977_s5 = inlined_call_operand.hbm [shape: f32[1,4], index: 5, kind: input, shape index: {}]   ;;  %s4978_s6 = inlined_call_operand.hbm [shape: f32[1,4], index: 6, kind: input, shape index: {}]   ;;  %s4979_s7 = inlined_call_operand.hbm [shape: f32[2,64,8], index: 7, kind: output, shape index: {}]  }
   0x1   :  { %14 = vsyncpa [#allocation5 + $0x1], 0 }
   0x2   :  { %15 = vsyncpa [#allocation8], 0 }
   0x3   :  { %16 = vsyncpa [#allocation11], 0 }
   0x4   :  { %17 = vsyncpa [#allocation14], 0 }
   0x5   :  { %18 = vsyncpa [#allocation6], 0 }
   0x6   :  { %20 = vsyncpa [#allocation6 + $0x1], 0  ;;  %s4076_s24 = smov 0   ;;  %s4078_s25 = smov 0  }
   0x7   :  { %s4080_s26 = smov 0   ;;  %s4082_s27 = smov 0  }
   0x8 LB: > { %s4018_s28 = smov [#allocation7]   ;;  %s4097_s30 = sadd.s32 4294967295, %s4016_s27   ;;  %s4016_s27 = sphi %s4082_s27, %s5005_s27   ;;  %s4012_s26 = sphi %s4080_s26, %s5004_s26   ;;  %s4008_s25 = sphi %s4078_s25, %s5003_s25   ;;  %s4004_s24 = sphi %s4076_s24, %s5002_s24  }
   0x9   : > { %s221_s29 = sshll.u32 %s4018_s28, 4  ;;  %p3128_p0 = scmp.ge.s32.totalorder %s4016_s27, 1  ;;  %s4102_s29 = int_to_ptr.vmem [resolvable:$true] %s221_s29 }
   0xa   : > { %p4980_p1 = scmp.eq.s32.totalorder %s4097_s30, 0  ;;  %p209_p2 = scmp.lt.s32.totalorder %s4016_s27, 3 }
   0xb   : > { %s4019_s9 = smov [#allocation10]   ;;  %s4020_s12 = smov [#allocation13]  }
   0xc   : > { %p4104_p3 = pnand %p3128_p0, %p209_p2  ;;  %s246_s10 = sshll.u32 %s4019_s9, 4  ;;  %s4117_s10 = int_to_ptr.vmem [resolvable:$true] %s246_s10 }
   0xd   : > { %s268_s13 = sshll.u32 %s4020_s12, 4  ;;  %s3740_s16 = scalar_lea.hbm %s4973_s1, 288  ;;  %s4119_s13 = int_to_ptr.vmem [resolvable:$true] %s268_s13 }
   0xe   : > { %s4983_s8 = scalar_select %p4104_p3, 1, 0 }
   0xf   : > { %p3587_p5 = pneg %p4104_p3  ;;  %p3741_p7 = scmp.ne.s32.totalorder %s4973_s1, %s3740_s16 }
  0x10   : > { %p3747_p11 = scmp.lt.u32.totalorder %s3740_s16, %s4973_s1 }
  0x11   : > { %p4113_p6 = pnand %p3587_p5, %p4980_p1 }
  0x13   : > { %p4129_p8 = pneg %p4113_p6 }
  0x15   : > { %p3743_p9 = pnand %p4129_p8, %p3741_p7 }
  0x17   : > { %p3744_p10 = pneg %p3743_p9 }
  0x19   : > { %p3749_p12 = pnand %p3747_p11, %p3744_p10 }
  0x1b   : > { %3752 = shalt.err (!%p3749_p12)
}
  0x1c   : > { %s3753_s22 = scalar_lea.vmem %s4102_s29, 288  ;;  %p3761_p5 = scmp.lt.s32.totalorder %s4102_s29, %s4102_s29 }
  0x1d   : > { %p3754_p13 = scmp.ne.s32.totalorder %s4102_s29, %s3753_s22  ;;  %p3762_p4 = scmp.lt.s32.totalorder %s3753_s22, %s3753_s22 }
  0x1f   : > { %p3756_p0 = pnand %p3754_p13, %p4129_p8  ;;  %p3763_p7 = por %p3762_p4, %p3761_p5 }
  0x21   : > { %p3757_p2 = pneg %p3756_p0 }
  0x23   : > { %p3764_p9 = pnand %p3763_p7, %p3757_p2 }
  0x25   : > { %3767 = shalt.err (!%p3764_p9)
}
  0x26   : > { %s4021_s23 = smov 32   ;;  %s4022_s28 = smov 2  }
  0x27   : > { %3590 = dma.hbm_to_vmem [thread:$0]  (!%p4113_p6), %s4973_s1, 288, %s4102_s29, [#allocation8], %s4021_s23, %s4021_s23, %s4022_s28  }
  0x28   : > { %s3768_s16 = scalar_lea.hbm %s4975_s3, 16 }
  0x29   : > { %p3769_p4 = scmp.ne.s32.totalorder %s4975_s3, %s3768_s16  ;;  %p3775_p12 = scmp.lt.u32.totalorder %s3768_s16, %s4975_s3 }
  0x2b   : > { %p3771_p10 = pnand %p3769_p4, %p4129_p8 }
  0x2d   : > { %p3772_p11 = pneg %p3771_p10 }
  0x2f   : > { %p3777_p13 = pnand %p3775_p12, %p3772_p11 }
  0x31   : > { %3780 = shalt.err (!%p3777_p13)
}
  0x32   : > { %s3781_s29 = scalar_lea.vmem %s4117_s10, 16  ;;  %s3788_s22 = scalar_lea.vmem %s4117_s10, 32 }
  0x33   : > { %p3782_p0 = scmp.ne.s32.totalorder %s4117_s10, %s3781_s29  ;;  %p3789_p7 = scmp.lt.s32.totalorder %s4117_s10, %s4117_s10 }
  0x34   : > { %p3790_p9 = scmp.lt.s32.totalorder %s3788_s22, %s3781_s29 }
  0x35   : > { %p3784_p2 = pnand %p3782_p0, %p4129_p8 }
  0x36   : > { %p3791_p4 = por %p3790_p9, %p3789_p7 }
  0x37   : > { %p3785_p5 = pneg %p3784_p2 }
  0x39   : > { %p3792_p10 = pnand %p3791_p4, %p3785_p5 }
  0x3b   : > { %3795 = shalt.err (!%p3792_p10)
}
  0x3c   : > { %3596 = dma.hbm_to_vmem [thread:$0]  (!%p4113_p6), %s4975_s3, 16, %s4117_s10, [#allocation11]  }
  0x3d   : > { %s3796_s14 = scalar_lea.hbm %s4977_s5, 16 }
  0x3e   : > { %p3797_p11 = scmp.ne.s32.totalorder %s4977_s5, %s3796_s14  ;;  %p3803_p0 = scmp.lt.u32.totalorder %s3796_s14, %s4977_s5 }
  0x40   : > { %p3799_p12 = pnand %p3797_p11, %p4129_p8 }
  0x42   : > { %p3800_p13 = pneg %p3799_p12 }
  0x44   : > { %p3805_p2 = pnand %p3803_p0, %p3800_p13 }
  0x46   : > { %3808 = shalt.err (!%p3805_p2)
}
  0x47   : > { %s3809_s10 = scalar_lea.vmem %s4119_s13, 16  ;;  %s3816_s20 = scalar_lea.vmem %s4119_s13, 32 }
  0x48   : > { %p3810_p5 = scmp.ne.s32.totalorder %s4119_s13, %s3809_s10  ;;  %p3817_p4 = scmp.lt.s32.totalorder %s4119_s13, %s4119_s13 }
  0x49   : > { %p3818_p10 = scmp.lt.s32.totalorder %s3816_s20, %s3809_s10 }
  0x4a   : > { %p3812_p7 = pnand %p3810_p5, %p4129_p8 }
  0x4b   : > { %p3819_p11 = por %p3818_p10, %p3817_p4 }
  0x4c   : > { %p3813_p9 = pneg %p3812_p7 }
  0x4e   : > { %p3820_p12 = pnand %p3819_p11, %p3813_p9 }
  0x50   : > { %3823 = shalt.err (!%p3820_p12)
}
  0x51   : > { %3602 = dma.hbm_to_vmem [thread:$0]  (!%p4113_p6), %s4977_s5, 16, %s4119_s13, [#allocation14]  }
  0x52   : > { %s4023_s22 = smov [#allocation9]   ;;  %s4024_s28 = smov [#allocation12]  }
  0x53   : > { %s235_s23 = sshll.u32 %s4023_s22, 4  ;;  %s257_s9 = sshll.u32 %s4024_s28, 4  ;;  %s236_s23 = int_to_ptr.vmem [resolvable:$true] %s235_s23  ;;  %s258_s9 = int_to_ptr.vmem [resolvable:$true] %s257_s9 }
  0x54   : > { %s3824_s15 = scalar_lea.hbm %s4974_s2, 16 }
  0x55   : > { %p3825_p13 = scmp.ne.s32.totalorder %s4974_s2, %s3824_s15  ;;  %p3831_p5 = scmp.lt.u32.totalorder %s3824_s15, %s4974_s2 }
  0x57   : > { %p3827_p0 = pnand %p3825_p13, %p4129_p8 }
  0x59   : > { %p3828_p2 = pneg %p3827_p0 }
  0x5b   : > { %p3833_p7 = pnand %p3831_p5, %p3828_p2 }
  0x5d   : > { %3836 = shalt.err (!%p3833_p7)
}
  0x5e   : > { %s3837_s13 = scalar_lea.vmem %s236_s23, 16  ;;  %s3844_s20 = scalar_lea.vmem %s236_s23, 32 }
  0x5f   : > { %p3838_p9 = scmp.ne.s32.totalorder %s236_s23, %s3837_s13  ;;  %p3845_p11 = scmp.lt.s32.totalorder %s236_s23, %s236_s23 }
  0x60   : > { %p3846_p12 = scmp.lt.s32.totalorder %s3844_s20, %s3837_s13 }
  0x61   : > { %p3840_p4 = pnand %p3838_p9, %p4129_p8 }
  0x62   : > { %p3847_p1 = por %p3846_p12, %p3845_p11 }
  0x63   : > { %p3841_p10 = pneg %p3840_p4 }
  0x65   : > { %p3848_p3 = pnand %p3847_p1, %p3841_p10 }
  0x67   : > { %3851 = shalt.err (!%p3848_p3)
}
  0x68   : > { %3593 = dma.hbm_to_vmem [thread:$0]  (!%p4113_p6), %s4974_s2, 16, %s236_s23, [#allocation8]  }
  0x69   : > { %s3852_s12 = scalar_lea.hbm %s4976_s4, 32 }
  0x6a   : > { %p3853_p13 = scmp.ne.s32.totalorder %s4976_s4, %s3852_s12  ;;  %p3859_p3 = scmp.lt.u32.totalorder %s3852_s12, %s4976_s4 }
  0x6c   : > { %p3855_p0 = pnand %p3853_p13, %p4129_p8 }
  0x6e   : > { %p3856_p1 = pneg %p3855_p0 }
  0x70   : > { %p3861_p2 = pnand %p3859_p3, %p3856_p1 }
  0x72   : > { %3864 = shalt.err (!%p3861_p2)
}
  0x73   : > { %s3865_s18 = scalar_lea.vmem %s258_s9, 32  ;;  %p3873_p4 = scmp.lt.s32.totalorder %s258_s9, %s258_s9 }
  0x74   : > { %p3866_p5 = scmp.ne.s32.totalorder %s258_s9, %s3865_s18  ;;  %p3874_p10 = scmp.lt.s32.totalorder %s3865_s18, %s3865_s18 }
  0x76   : > { %p3868_p7 = pnand %p3866_p5, %p4129_p8  ;;  %p3875_p11 = por %p3874_p10, %p3873_p4 }
  0x78   : > { %p3869_p9 = pneg %p3868_p7 }
  0x7a   : > { %p3876_p12 = pnand %p3875_p11, %p3869_p9 }
  0x7c   : > { %3879 = shalt.err (!%p3876_p12)
}
  0x7d   : > { %3599 = dma.hbm_to_vmem [thread:$0]  (!%p4113_p6), %s4976_s4, 32, %s258_s9, [#allocation11]  }
  0x7e   : > { %s4025_s13 = smov [#allocation15]   ;;  %s3880_s22 = scalar_lea.hbm %s4978_s6, 16 }
  0x7f   : > { %s279_s20 = sshll.u32 %s4025_s13, 4  ;;  %p3881_p13 = scmp.ne.s32.totalorder %s4978_s6, %s3880_s22  ;;  %s280_s20 = int_to_ptr.vmem [resolvable:$true] %s279_s20 }
  0x80   : > { %p3887_p3 = scmp.lt.u32.totalorder %s3880_s22, %s4978_s6 }
  0x81   : > { %p3883_p0 = pnand %p3881_p13, %p4129_p8 }
  0x83   : > { %p3884_p1 = pneg %p3883_p0 }
  0x85   : > { %p3889_p2 = pnand %p3887_p3, %p3884_p1 }
  0x87   : > { %3892 = shalt.err (!%p3889_p2)
}
  0x88   : > { %s3893_s9 = scalar_lea.vmem %s280_s20, 16  ;;  %s3900_s16 = scalar_lea.vmem %s280_s20, 32 }
  0x89   : > { %p3894_p5 = scmp.ne.s32.totalorder %s280_s20, %s3893_s9  ;;  %p3901_p4 = scmp.lt.s32.totalorder %s280_s20, %s280_s20 }
  0x8a   : > { %p3902_p10 = scmp.lt.s32.totalorder %s3900_s16, %s3893_s9 }
  0x8b   : > { %p3896_p7 = pnand %p3894_p5, %p4129_p8 }
  0x8c   : > { %p3903_p11 = por %p3902_p10, %p3901_p4 }
  0x8d   : > { %p3897_p9 = pneg %p3896_p7 }
  0x8f   : > { %p3904_p12 = pnand %p3903_p11, %p3897_p9 }
  0x91   : > { %3907 = shalt.err (!%p3904_p12)
}
  0x92   : > { %3605 = dma.hbm_to_vmem [thread:$0]  (!%p4113_p6), %s4978_s6, 16, %s280_s20, [#allocation14]  }
  0x93   : > { %s3127_s19 = sadd.s32 4294967294, %s4016_s27   ;;  %s4254_s11 = sadd.s32 1, %s4016_s27  }
  0x94   : > { %s30_s23 = ssub.s32 %s4016_s27, %s4254_s11  ;;  %s33_s10 = sadd.s32 1, %s4012_s26 }
  0x95   : > { %p31_p8 = scmp.eq.s32.totalorder %s30_s23, 0  ;;  %p40_p13 = scmp.ne.s32.totalorder %s4012_s26, %s4008_s25 }
  0x96   : > { %p41_p0 = scmp.eq.s32.totalorder %s4016_s27, 0  ;;  %p46_p1 = scmp.ne.s32.totalorder %s4008_s25, %s4004_s24 }
  0x97   : > { %s4265_s13 = scalar_select %p31_p8, %s4012_s26, %s33_s10  }
  0x98   : > { %p4267_p3 = por %p41_p0, %p40_p13  ;;  %p4987_p2 = scmp.eq.s32.totalorder %s4097_s30, 0 }
  0x99   : > { %p196_p5 = scmp.eq.s32.totalorder %s4097_s30, 1  ;;  %p202_p7 = scmp.eq.s32.totalorder %s3127_s19, 1 }
  0x9a   : > { %p4273_p6 = por %p4987_p2, %p46_p1  ;;  %p3620_p9 = scmp.lt.s32.totalorder %s4016_s27, 2 }
  0x9b   : > { %s290_s29 = sand.u32 1, %s4012_s26   ;;  %p4280_p4 = por %p196_p5, %p40_p13 }
  0x9c   : > { %p4284_p10 = por %p202_p7, %p46_p1  ;;  %s3136_s12 = sshll.u32 %s290_s29, 8 }
  0x9d   : > { %s4989_s22 = scalar_select %p4280_p4, 1, 0 }
  0x9e   : > { %s4990_s28 = scalar_select %p4284_p10, 1, 0 }
  0x9f   : > { %s3263_s14 = sshll.u32 %s4016_s27, 12  ;;  %s294_s17 = scalar_lea.vmem [#allocation4], %s3136_s12 }
  0xa0   : > { %s4292_s16 = scalar_lea.hbm %s4972_s0, %s3263_s14  ;;  %s301_s18 = sshll.u32 %s294_s17, 4  ;;  %s4294_s18 = int_to_ptr.vmem [resolvable:$true] %s301_s18 }
  0xa1   : > { %p4298_p11 = pnand %p3620_p9, %p4267_p3  ;;  %s4302_s23 = scalar_lea.sflag [#allocation5], %s290_s29 }
  0xa2   : > { %s3908_s10 = scalar_lea.hbm %s4292_s16, 4096  ;;  %s3913_s21 = scalar_lea.hbm %s4972_s0, 8192 }
  0xa3   : > { %p3909_p12 = scmp.ne.s32.totalorder %s4292_s16, %s3908_s10  ;;  %p3910_p8 = pneg %p4298_p11 }
  0xa4   : > { %p3914_p1 = scmp.lt.u32.totalorder %s4292_s16, %s4972_s0  ;;  %p3915_p3 = scmp.lt.u32.totalorder %s3913_s21, %s3908_s10 }
  0xa5   : > { %p3911_p13 = pnand %p3910_p8, %p3909_p12  ;;  %p3917_p5 = scmp.lt.u32.totalorder %s3908_s10, %s4292_s16 }
  0xa6   : > { %p3916_p2 = por %p3915_p3, %p3914_p1 }
  0xa7   : > { %p3912_p0 = pneg %p3911_p13 }
  0xa8   : > { %p3918_p7 = por %p3917_p5, %p3916_p2 }
  0xaa   : > { %p3919_p9 = pnand %p3918_p7, %p3912_p0 }
  0xac   : > { %3922 = shalt.err (!%p3919_p9)
}
  0xad   : > { %s3923_s29 = scalar_lea.vmem %s4294_s18, 4096  ;;  %s4026_s17 = smov [#allocation4]  }
  0xae   : > { %p3924_p12 = scmp.ne.s32.totalorder %s4294_s18, %s3923_s29  ;;  %s3928_s12 = sshll.u32 %s4026_s17, 4  ;;  %s3929_s12 = int_to_ptr.vmem [resolvable:$false] %s3928_s12 }
  0xaf   : > { %s3930_s14 = scalar_lea.vmem %s3929_s12, 8192  ;;  %p3931_p4 = scmp.lt.s32.totalorder %s4294_s18, %s3929_s12 }
  0xb0   : > { %p3926_p13 = pnand %p3924_p12, %p3910_p8  ;;  %p3932_p1 = scmp.lt.s32.totalorder %s3930_s14, %s3923_s29 }
  0xb2   : > { %p3927_p10 = pneg %p3926_p13  ;;  %p3933_p3 = por %p3932_p1, %p3931_p4 }
  0xb4   : > { %p3934_p2 = pnand %p3933_p3, %p3927_p10 }
  0xb6   : > { %3937 = shalt.err (!%p3934_p2)
}
  0xb7   : > { %s4027_s10 = smov 128   ;;  %s4028_s21 = smov 8  }
  0xb8   : > { %3609 = dma.hbm_to_vmem [thread:$0]  (!%p4298_p11), %s4292_s16, 4096, %s4294_s18, %s4302_s23, %s4027_s10, %s4027_s10, %s4028_s21  }
  0xb9   : > { %p4992_p8 = scmp.ne.s32.totalorder %s4983_s8, 0 }
  0xba   : > { %s4333_s15 = sand.u32 (!%p4992_p8), 1, %s4008_s25  }
  0xbb   : > { %313 = sbr.rel (%p4992_p8) target bundleno = 819 (0x333), region = 48  ;;  %s3140_s9 = sshll.u32 (!%p4992_p8), %s4333_s15, 8 }
  0xbc   : > { %s316_s29 = scalar_lea.sflag (!%p4992_p8), [#allocation5], %s4333_s15  ;;  %s4337_s17 = scalar_lea.vmem (!%p4992_p8), [#allocation4], %s3140_s9 }
  0xc2   : > { %3983 = dma.done.wait (%p4273_p6), %s316_s29, 4096  }
  0xc3   : > { %3985 = vsyncadd (%p4273_p6), %s316_s29, 4294963200  ;;  %p4993_p4 = scmp.eq.s32.totalorder %s4097_s30, 0 }
  0xc5   : > { %3987 = dma.done.wait (%p4993_p4), [#allocation8], 304   ;;  %p4994_p10 = pmov %p4993_p4 }
  0xc6   : > { %p4995_p11 = pmov %p4993_p4 }
  0xc7   : > { %3989 = vsyncadd (%p4994_p10), [#allocation8], 4294966992 }
  0xc8   : > { %3991 = dma.done.wait (%p4995_p11), [#allocation11], 48   ;;  %p4996_p0 = pmov %p4993_p4 }
  0xca   : > { %3993 = vsyncadd (%p4996_p0), [#allocation11], 4294967248  ;;  %p4997_p5 = pmov %p4996_p0 }
  0xcb   : > { %p4998_p7 = pmov %p4996_p0 }
  0xcc   : > { %3995 = dma.done.wait (%p4997_p5), [#allocation14], 32  }
  0xcd   : > { %3997 = vsyncadd (%p4998_p7), [#allocation14], 4294967264  ;;  %vm639_vm0 = vcmask 15360   ;;  %v4029_v0 = vmov 0.0   ;;  %vm642_vm1 = vcmask 8192   ;;  %v377_v2 = vld [vmem:[%s4337_s17 + $0x18] sm:$0xff] }
  0xce   : > { %648 = vst.msk [vmem:[#allocation2 + $0x38] sm:$0xff] %vm639_vm0, %v4029_v0  ;;  %640 = vst.msk [vmem:[#allocation2] sm:$0xff] %vm639_vm0, %v4029_v0  ;;  %v4030_v1 = vmov -1e+30   ;;  %v379_v3 = vld [vmem:[%s4337_s17 + $0x28] sm:$0xff]  ;;  %vm745_vm2 = vcmask 14336  }
  0xcf   : > { %641 = vst.msk [vmem:[#allocation2 + $0x8] sm:$0xff] %vm639_vm0, %v4029_v0  ;;  %644 = vst.msk [vmem:[#allocation2 + $0x18] sm:$0xff] %vm639_vm0, %v4029_v0  ;;  %v4460_v4 = vld [vmem:[%s4337_s17 + $0x8] sm:$0xff]  ;;  %vm466_vm3 = vcmask 1046528   ;;  %vm984_vm4 = vcmask 1041408   ;;  %v409_v5 = vadd.f32 %v379_v3, %v377_v2  ;;  %v471_v6 = vrot.slane %v377_v2, 1 }
  0xd0   : > { %645 = vst.msk [vmem:[#allocation2 + $0x20] sm:$0xff] %vm639_vm0, %v4029_v0  ;;  %647 = vst.msk [vmem:[#allocation2 + $0x30] sm:$0xff] %vm639_vm0, %v4029_v0  ;;  %v474_v7 = vrot.slane %v379_v3, 1  ;;  %v407_v8 = vadd.f32 %v377_v2, %v4460_v4  ;;  %v4464_v9 = vld [vmem:[%s4337_s17 + $0x10] sm:$0xff]  ;;  %v378_v10 = vld [vmem:[%s4337_s17 + $0x20] sm:$0xff]  ;;  %v468_v12 = vrot.slane %v4460_v4, 1 }
  0xd1   : > { %650 = vst.msk [vmem:[#allocation2 + $0x48] sm:$0xff] %vm639_vm0, %v4029_v0  ;;  %651 = vst.msk [vmem:[#allocation2 + $0x50] sm:$0xff] %vm639_vm0, %v4029_v0  ;;  %v381_v11 = vld [vmem:[%s4337_s17 + $0x38] sm:$0xff]  ;;  %v408_v13 = vadd.f32 %v378_v10, %v4464_v9  ;;  %v470_v14 = vrot.slane %v4464_v9, 1  ;;  %v473_v15 = vrot.slane %v378_v10, 1  ;;  %v4472_v16 = vld [vmem:[%s4337_s17 + $0x48] sm:$0xff]  ;;  %v545_v19 = vadd.f32 %v471_v6, %v409_v5 }
  0xd2   : > { %653 = vst.msk [vmem:[#allocation2 + $0x60] sm:$0xff] %vm639_vm0, %v4029_v0  ;;  %654 = vst.msk [vmem:[#allocation2 + $0x68] sm:$0xff] %vm639_vm0, %v4029_v0  ;;  %v380_v17 = vld [vmem:[%s4337_s17 + $0x30] sm:$0xff]  ;;  %v4476_v18 = vld [vmem:[%s4337_s17 + $0x40] sm:$0xff]  ;;  %v413_v20 = vadd.f32 %v4472_v16, %v381_v11  ;;  %v477_v21 = vrot.slane %v381_v11, 1  ;;  %v4480_v22 = vrot.slane %v4472_v16, 1  ;;  %v543_v23 = vadd.f32 %v468_v12, %v407_v8 }
  0xd3   : > { %656 = vst.msk [vmem:[#allocation2 + $0x78] sm:$0xff] %vm639_vm0, %v4029_v0  ;;  %657 = vst.msk [vmem:[#allocation2 + $0x80] sm:$0xff] %vm639_vm0, %v4029_v0  ;;  %v4485_v24 = vsel %vm466_vm3, %v470_v14, %v471_v6  ;;  %v475_v25 = vsel %vm466_vm3, %v473_v15, %v474_v7  ;;  %v412_v26 = vadd.f32 %v4476_v18, %v380_v17  ;;  %v1557_v27 = vld [vmem:[#allocation7 + $0x8] sm:$0x3]  ;;  %v476_v31 = vrot.slane %v380_v17, 1  ;;  %v385_v36 = vld [vmem:[%s4337_s17 + $0x58] sm:$0xff] }
  0xd4   : > { %659 = vst.msk [vmem:[#allocation2 + $0x90] sm:$0xff] %vm639_vm0, %v4029_v0  ;;  %660 = vst.msk [vmem:[#allocation2 + $0x98] sm:$0xff] %vm639_vm0, %v4029_v0  ;;  %v582_v28 = vadd.f32 %v545_v19, %v474_v7  ;;  %v544_v29 = vadd.f32 %v4485_v24, %v408_v13  ;;  %v549_v30 = vadd.f32 %v477_v21, %v413_v20  ;;  %3411 = vmatprep.subr.msk.mxu0 %vm984_vm4, %v1557_v27  ;;  %v4494_v37 = vld [vmem:[%s4337_s17 + $0x68] sm:$0xff]  ;;  %v384_v46 = vld [vmem:[%s4337_s17 + $0x50] sm:$0xff]  ;;  %s4031_s8 = smov 126   ;;  %s4032_s20 = smov 4  }
  0xd5   : > { %662 = vst.msk [vmem:[#allocation2 + $0xa8] sm:$0xff] %vm639_vm0, %v4029_v0  ;;  %663 = vst.msk [vmem:[#allocation2 + $0xb0] sm:$0xff] %vm639_vm0, %v4029_v0  ;;  %v580_v32 = vadd.f32 %v543_v23, %v471_v6  ;;  %v479_v33 = vrot.slane %v4476_v18, 1  ;;  %v411_v34 = vadd.f32 %v381_v11, %v379_v3  ;;  %v410_v35 = vadd.f32 %v380_v17, %v378_v10  ;;  %v4505_v47 = vld [vmem:[%s4337_s17 + $0x60] sm:$0xff]  ;;  %v4521_v58 = vld [vmem:[%s4337_s17 + $0x88] sm:$0xff]  ;;  %s3147_s16 = sshll.u32 %s4333_s15, 6 }
  0xd6   : > { %665 = vst.msk [vmem:[#allocation2 + $0xc0] sm:$0xff] %vm639_vm0, %v4029_v0  ;;  %666 = vst.msk [vmem:[#allocation2 + $0xc8] sm:$0xff] %vm639_vm0, %v4029_v0  ;;  %3412 = vmatpush3.msk.msra.mxu0 %vm984_vm4, %v1557_v27  ;;  %v612_v38 = vmul.f32 0.25, %v582_v28  ;;  %v581_v39 = vadd.f32 %v544_v29, %v475_v25  ;;  %v586_v40 = vadd.f32 %v549_v30, %v4480_v22  ;;  %v374_v52 = vld [vmem:[%s4337_s17] sm:$0xff]  ;;  %v483_v55 = vrot.slane %v385_v36, 1  ;;  %v4531_v6 = vld [vmem:[%s4337_s17 + $0x90] sm:$0xff] }
  0xd7   : > { %668 = vst.msk [vmem:[#allocation2 + $0xd8] sm:$0xff] %vm639_vm0, %v4029_v0  ;;  %669 = vst.msk [vmem:[#allocation2 + $0xe0] sm:$0xff] %vm639_vm0, %v4029_v0  ;;  %v478_v41 = vsel %vm466_vm3, %v476_v31, %v477_v21  ;;  %v610_v42 = vmul.f32 0.25, %v580_v32  ;;  %v4501_v43 = vsel %vm466_vm3, %v479_v33, %v4480_v22  ;;  %v547_v45 = vadd.f32 %v474_v7, %v411_v34  ;;  %v4518_v57 = vld [vmem:[%s4337_s17 + $0x80] sm:$0xff]  ;;  %v4534_v7 = vld [vmem:[%s4337_s17 + $0x98] sm:$0xff]  ;;  %s4896_s18 = scalar_lea.vmem [#allocation16], %s3147_s16 }
  0xd8   : > { %671 = vst.msk [vmem:[#allocation2 + $0xf0] sm:$0xff] %vm639_vm0, %v4029_v0  ;;  %672 = vst.msk [vmem:[#allocation2 + $0xf8] sm:$0xff] %vm639_vm0, %v4029_v0  ;;  %v548_v44 = vadd.f32 %v478_v41, %v412_v26  ;;  %811 = vrot.lane.b32.xlu0 %v612_v38, %s4031_s8  ;;  %v611_v48 = vmul.f32 0.25, %v581_v39  ;;  %v616_v49 = vmul.f32 0.25, %v586_v40  ;;  %v546_v50 = vadd.f32 %v475_v25, %v410_v35  ;;  %v959_v63 = vld [vmem:[#allocation7 + $0x2] sm:$0x3] }
  0xd9   : > { %674 = vst.msk [vmem:[#allocation2 + $0x108] sm:$0xff] %vm639_vm0, %v4029_v0  ;;  %675 = vst.msk [vmem:[#allocation2 + $0x110] sm:$0xff] %vm639_vm0, %v4029_v0  ;;  %v417_v51 = vadd.f32 %v4494_v37, %v385_v36  ;;  %807 = vrot.lane.b32.xlu1 %v610_v42, %s4031_s8  ;;  %v584_v54 = vadd.f32 %v547_v45, %v477_v21  ;;  %v4515_v56 = vrot.slane %v4494_v37, 1  ;;  %v482_v61 = vrot.slane %v384_v46, 1  ;;  %v943_v8 = vld [vmem:[#allocation2 + $0x1] ss:$2 sm:$0xff] }
  0xda   : > { %677 = vst.msk [vmem:[#allocation2 + $0x120] sm:$0xff] %vm639_vm0, %v4029_v0  ;;  %678 = vst.msk [vmem:[#allocation2 + $0x128] sm:$0xff] %vm639_vm0, %v4029_v0  ;;  %v585_v53 = vadd.f32 %v548_v44, %v4501_v43  ;;  %v583_v59 = vadd.f32 %v546_v50, %v478_v41  ;;  %v416_v60 = vadd.f32 %v4505_v47, %v384_v46  ;;  %v485_v62 = vrot.slane %v4505_v47, 1  ;;  %v941_v14 = vld [vmem:[#allocation7] sm:$0x3]  ;;  %v388_v21 = vld [vmem:[%s4337_s17 + $0x70] sm:$0xff] }
  0xdb   : > { %680 = vst.msk [vmem:[#allocation2 + $0x138] sm:$0xff] %vm639_vm0, %v4029_v0  ;;  %681 = vst.msk [vmem:[#allocation2 + $0x140] sm:$0xff] %vm639_vm0, %v4029_v0  ;;  %v614_v2 = vmul.f32 0.25, %v584_v54  ;;  %v553_v3 = vadd.f32 %v483_v55, %v417_v51  ;;  %v406_v5 = vadd.f32 %v4464_v9, %v374_v52  ;;  %3355 = vmatprep.subr.msk.mxu1 %vm984_vm4, %v959_v63  ;;  %v467_v13 = vrot.slane %v374_v52, 1  ;;  %v389_v23 = vld [vmem:[%s4337_s17 + $0x78] sm:$0xff]  ;;  %s2905_s19 = sshll.u32 %s4896_s18, 4  ;;  %s4917_s19 = int_to_ptr.vmem [resolvable:$true] %s2905_s19 }
  0xdc   : > { %683 = vst.msk [vmem:[#allocation2 + $0x150] sm:$0xff] %vm639_vm0, %v4029_v0  ;;  %684 = vst.msk [vmem:[#allocation2 + $0x158] sm:$0xff] %vm639_vm0, %v4029_v0  ;;  %809 = vrot.lane.b32.xlu0 %v611_v48, %s4031_s8  ;;  %v613_v10 = vmul.f32 0.25, %v583_v59  ;;  %v484_v11 = vsel %vm466_vm3, %v482_v61, %v483_v55  ;;  %v4543_v9 = vsel %vm466_vm3, %v485_v62, %v4515_v56  ;;  %3356 = vmatpush3.msk.msra.mxu1 %vm984_vm4, %v959_v63  ;;  %v4574_v39 = vld [vmem:[#allocation7 + $0x4] sm:$0x3]  ;;  %v4602_v61 = vld [vmem:[%s4337_s17 + $0xb8] sm:$0xff] }
  0xdd   : > { %686 = vst.msk [vmem:[#allocation2 + $0x168] sm:$0xff] %vm639_vm0, %v4029_v0  ;;  %687 = vst.msk [vmem:[#allocation2 + $0x170] sm:$0xff] %vm639_vm0, %v4029_v0  ;;  %819 = vrot.lane.b32.xlu1 %v616_v49, %s4031_s8  ;;  %v590_v15 = vadd.f32 %v553_v3, %v4515_v56  ;;  %v552_v17 = vadd.f32 %v484_v11, %v416_v60  ;;  %v414_v19 = vadd.f32 %v384_v46, %v4476_v18  ;;  %v394_v46 = vld [vmem:[%s4337_s17 + $0xa0] sm:$0xff]  ;;  %v395_v60 = vld [vmem:[%s4337_s17 + $0xa8] sm:$0xff]  ;;  %vm2873_vm5 = vcmask 31744   ;;  %s3264_s23 = sshll.u32 %s4097_s30, 10 }
  0xde   : > { %689 = vst.msk [vmem:[#allocation2 + $0x180] sm:$0xff] %vm639_vm0, %v4029_v0  ;;  %690 = vst.msk [vmem:[#allocation2 + $0x188] sm:$0xff] %vm639_vm0, %v4029_v0  ;;  %v415_v20 = vadd.f32 %v385_v36, %v4472_v16  ;;  %v469_v25 = vsel %vm466_vm3, %v467_v13, %v468_v12  ;;  %v420_v26 = vadd.f32 %v4518_v57, %v388_v21  ;;  %3357 = vmatprep.mubr.msk.f32.mxu1 %vm639_vm0, %v943_v8  ;;  %vm2882_vm6 = vcmask 64512   ;;  %s4925_s10 = scalar_lea.hbm %s4979_s7, %s3264_s23  ;;  %s2892_s30 = scalar_lea.sflag [#allocation6], %s4333_s15 }
  0xdf   : > { %646 = vst.msk [vmem:[#allocation2 + $0x28] sm:$0x1] %vm642_vm1, %v4029_v0  ;;  %643 = vst.msk [vmem:[#allocation2 + $0x10] sm:$0x1] %vm642_vm1, %v4029_v0  ;;  %v422_v27 = vadd.f32 %v4531_v6, %v4518_v57  ;;  %v423_v28 = vadd.f32 %v4534_v7, %v4521_v58  ;;  %v620_v18 = vmul.f32 0.25, %v590_v15  ;;  %v589_v16 = vadd.f32 %v552_v17, %v4543_v9  ;;  %v4626_v15 = vld [vmem:[%s4337_s17 + $0xc8] sm:$0xff] }
  0xe0   : > { %649 = vst.msk [vmem:[#allocation2 + $0x40] sm:$0x1] %vm642_vm1, %v4029_v0  ;;  %652 = vst.msk [vmem:[#allocation2 + $0x58] sm:$0x1] %vm642_vm1, %v4029_v0  ;;  %v542_v29 = vadd.f32 %v469_v25, %v406_v5  ;;  %v550_v30 = vadd.f32 %v4501_v43, %v414_v19  ;;  %3369 = vmatprep.subr.msk.mxu1 %vm984_vm4, %v941_v14  ;;  %v551_v4 = vadd.f32 %v4480_v22, %v415_v20  ;;  %v4641_v25 = vld [vmem:[%s4337_s17 + $0xd8] sm:$0xff]  ;;  %s3938_s21 = scalar_lea.vmem %s4917_s19, 1024 }
  0xe1   : > { %655 = vst.msk [vmem:[#allocation2 + $0x70] sm:$0x1] %vm642_vm1, %v4029_v0  ;;  %658 = vst.msk [vmem:[#allocation2 + $0x88] sm:$0x1] %vm642_vm1, %v4029_v0  ;;  %v488_v12 = vrot.slane %v388_v21, 1  ;;  %v489_v31 = vrot.slane %v389_v23, 1  ;;  %815 = vrot.lane.b32.xlu1 %v614_v2, %s4031_s8  ;;  %v419_v59 = vadd.f32 %v389_v23, %v4494_v37  ;;  %p3939_p6 = scmp.ne.s32.totalorder %s4917_s19, %s3938_s21 }
  0xe2   : > { %661 = vst.msk [vmem:[#allocation2 + $0xa0] sm:$0x1] %vm642_vm1, %v4029_v0  ;;  %664 = vst.msk [vmem:[#allocation2 + $0xb8] sm:$0x1] %vm642_vm1, %v4029_v0  ;;  %v491_v32 = vrot.slane %v4518_v57, 1  ;;  %v619_v33 = vmul.f32 0.25, %v589_v16  ;;  %v579_v34 = vadd.f32 %v542_v29, %v4485_v24  ;;  %v587_v35 = vadd.f32 %v550_v30, %v484_v11 }
  0xe3   : > { %667 = vst.msk [vmem:[#allocation2 + $0xd0] sm:$0x1] %vm642_vm1, %v4029_v0  ;;  %670 = vst.msk [vmem:[#allocation2 + $0xe8] sm:$0x1] %vm642_vm1, %v4029_v0  ;;  %v492_v36 = vrot.slane %v4521_v58, 1  ;;  %v588_v22 = vadd.f32 %v551_v4, %v483_v55  ;;  %v490_v40 = vsel %vm466_vm3, %v488_v12, %v489_v31  ;;  %v494_v41 = vrot.slane %v4531_v6, 1 }
  0xe4   : > { %673 = vst.msk [vmem:[#allocation2 + $0x100] sm:$0x1] %vm642_vm1, %v4029_v0  ;;  %676 = vst.msk [vmem:[#allocation2 + $0x118] sm:$0x1] %vm642_vm1, %v4029_v0  ;;  %v609_v24 = vmul.f32 0.25, %v579_v34  ;;  %v617_v43 = vmul.f32 0.25, %v587_v35  ;;  %v556_v45 = vadd.f32 %v490_v40, %v420_v26  ;;  %v421_v55 = vadd.f32 %v4521_v58, %v389_v23 }
  0xe5   : > { %679 = vst.msk [vmem:[#allocation2 + $0x130] sm:$0x1] %vm642_vm1, %v4029_v0  ;;  %682 = vst.msk [vmem:[#allocation2 + $0x148] sm:$0x1] %vm642_vm1, %v4029_v0  ;;  %v493_v44 = vsel %vm466_vm3, %v491_v32, %v492_v36  ;;  %v559_v52 = vadd.f32 %v492_v36, %v423_v28  ;;  %827 = vrot.lane.b32.xlu1 %v620_v18, %s4031_s8  ;;  %v418_v57 = vadd.f32 %v388_v21, %v4505_v47  ;;  %v4638_v23 = vld [vmem:[%s4337_s17 + $0xd0] sm:$0xff]  ;;  %v402_v32 = vld [vmem:[%s4337_s17 + $0xe0] sm:$0xff] }
  0xe6   : > { %685 = vst.msk [vmem:[#allocation2 + $0x160] sm:$0x1] %vm642_vm1, %v4029_v0  ;;  %688 = vst.msk [vmem:[#allocation2 + $0x178] sm:$0x1] %vm642_vm1, %v4029_v0  ;;  %v558_v51 = vadd.f32 %v493_v44, %v422_v27  ;;  %v593_v54 = vadd.f32 %v556_v45, %v493_v44  ;;  %v557_v47 = vadd.f32 %v489_v31, %v421_v55  ;;  %v4634_v19 = vrot.slane %v4602_v61, 1  ;;  %v405_v45 = vld [vmem:[%s4337_s17 + $0xf8] sm:$0xff] }
  0xe7   : > { %691 = vst.msk [vmem:[#allocation2 + $0x190] sm:$0x1] %vm642_vm1, %v4029_v0  ;;  %694 = vst.msk [vmem:[#allocation3 + $0x10] sm:$0x1] %vm642_vm1, %v4030_v1  ;;  %v4527_v0 = vld [vmem:[#allocation7 + $0xa] sm:$0x3]  ;;  %v554_v37 = vadd.f32 %v4543_v9, %v418_v57  ;;  %v555_v3 = vadd.f32 %v4515_v56, %v419_v59  ;;  %v425_v21 = vadd.f32 %v395_v60, %v4534_v7 }
  0xe8   : > { %699 = vst.msk [vmem:[#allocation3 + $0x38] sm:$0xff] %vm639_vm0, %v4030_v1  ;;  %692 = vst.msk [vmem:[#allocation3] sm:$0xff] %vm639_vm0, %v4030_v1  ;;  %3425 = vmatprep.subr.msk.mxu0 %vm984_vm4, %v4527_v0  ;;  %v4609_v58 = vmul.f32 0.25, %v593_v54  ;;  %v594_v11 = vadd.f32 %v557_v47, %v492_v36  ;;  %v498_v56 = vrot.slane %v395_v60, 1  ;;  %v504_v44 = vrot.slane %v4626_v15, 1  ;;  %p4999_p9 = scmp.ne.s32.totalorder %s4989_s22, 0 }
  0xe9   : > { %693 = vst.msk [vmem:[#allocation3 + $0x8] sm:$0xff] %vm639_vm0, %v4030_v1  ;;  %695 = vst.msk [vmem:[#allocation3 + $0x18] sm:$0xff] %vm639_vm0, %v4030_v1  ;;  %805 = vrot.lane.b32.xlu1 %v609_v24, %s4031_s8  ;;  %v591_v9 = vadd.f32 %v554_v37, %v490_v40  ;;  %v592_v13 = vadd.f32 %v555_v3, %v489_v31  ;;  %v4666_v40 = vld [vmem:[#allocation7 + $0xc] sm:$0x3]  ;;  %v575_v37 = vrot.slane %v405_v45, 1  ;;  %s4033_s9 = smov [#allocation16]  }
  0xea   : > { %696 = vst.msk [vmem:[#allocation3 + $0x20] sm:$0xff] %vm639_vm0, %v4030_v1  ;;  %698 = vst.msk [vmem:[#allocation3 + $0x30] sm:$0xff] %vm639_vm0, %v4030_v1  ;;  %v624_v27 = vmul.f32 0.25, %v594_v11  ;;  %p3940_p12 = pnand %p3939_p6, %p4999_p9  ;;  %s3942_s29 = sshll.u32 %s4033_s9, 4  ;;  %s3943_s29 = int_to_ptr.vmem [resolvable:$false] %s3942_s29 }
  0xeb   : > { %697 = vst.msk [vmem:[#allocation3 + $0x28] sm:$0x1] %vm642_vm1, %v4030_v1  ;;  %700 = vst.msk [vmem:[#allocation3 + $0x40] sm:$0x1] %vm642_vm1, %v4030_v1  ;;  %v4643_v16 = vmul.f32 0.25, %v592_v13  ;;  %p3945_p1 = scmp.lt.s32.totalorder %s4917_s19, %s3943_s29 }
  0xec   : > { %701 = vst.msk [vmem:[#allocation3 + $0x48] sm:$0xff] %vm639_vm0, %v4030_v1  ;;  %702 = vst.msk [vmem:[#allocation3 + $0x50] sm:$0xff] %vm639_vm0, %v4030_v1  ;;  %p3941_p13 = pneg %p3940_p12 }
  0xed   : > { %703 = vst.msk [vmem:[#allocation3 + $0x58] sm:$0x1] %vm642_vm1, %v4030_v1  ;;  %706 = vst.msk [vmem:[#allocation3 + $0x70] sm:$0x1] %vm642_vm1, %v4030_v1 }
  0xee   : > { %704 = vst.msk [vmem:[#allocation3 + $0x60] sm:$0xff] %vm639_vm0, %v4030_v1  ;;  %705 = vst.msk [vmem:[#allocation3 + $0x68] sm:$0xff] %vm639_vm0, %v4030_v1 }
  0xef   : > { %707 = vst.msk [vmem:[#allocation3 + $0x78] sm:$0xff] %vm639_vm0, %v4030_v1  ;;  %708 = vst.msk [vmem:[#allocation3 + $0x80] sm:$0xff] %vm639_vm0, %v4030_v1 }
  0xf0   : > { %709 = vst.msk [vmem:[#allocation3 + $0x88] sm:$0x1] %vm642_vm1, %v4030_v1  ;;  %712 = vst.msk [vmem:[#allocation3 + $0xa0] sm:$0x1] %vm642_vm1, %v4030_v1 }
  0xf1   : > { %710 = vst.msk [vmem:[#allocation3 + $0x90] sm:$0xff] %vm639_vm0, %v4030_v1  ;;  %711 = vst.msk [vmem:[#allocation3 + $0x98] sm:$0xff] %vm639_vm0, %v4030_v1 }
  0xf2   : > { %713 = vst.msk [vmem:[#allocation3 + $0xa8] sm:$0xff] %vm639_vm0, %v4030_v1  ;;  %714 = vst.msk [vmem:[#allocation3 + $0xb0] sm:$0xff] %vm639_vm0, %v4030_v1 }
  0xf3   : > { %715 = vst.msk [vmem:[#allocation3 + $0xb8] sm:$0x1] %vm642_vm1, %v4030_v1  ;;  %718 = vst.msk [vmem:[#allocation3 + $0xd0] sm:$0x1] %vm642_vm1, %v4030_v1 }
  0xf4   : > { %716 = vst.msk [vmem:[#allocation3 + $0xc0] sm:$0xff] %vm639_vm0, %v4030_v1  ;;  %717 = vst.msk [vmem:[#allocation3 + $0xc8] sm:$0xff] %vm639_vm0, %v4030_v1 }
  0xf5   : > { %719 = vst.msk [vmem:[#allocation3 + $0xd8] sm:$0xff] %vm639_vm0, %v4030_v1  ;;  %720 = vst.msk [vmem:[#allocation3 + $0xe0] sm:$0xff] %vm639_vm0, %v4030_v1 }
  0xf6   : > { %721 = vst.msk [vmem:[#allocation3 + $0xe8] sm:$0x1] %vm642_vm1, %v4030_v1  ;;  %724 = vst.msk [vmem:[#allocation3 + $0x100] sm:$0x1] %vm642_vm1, %v4030_v1 }
  0xf7   : > { %722 = vst.msk [vmem:[#allocation3 + $0xf0] sm:$0xff] %vm639_vm0, %v4030_v1  ;;  %723 = vst.msk [vmem:[#allocation3 + $0xf8] sm:$0xff] %vm639_vm0, %v4030_v1 }
  0xf8   : > { %725 = vst.msk [vmem:[#allocation3 + $0x108] sm:$0xff] %vm639_vm0, %v4030_v1  ;;  %726 = vst.msk [vmem:[#allocation3 + $0x110] sm:$0xff] %vm639_vm0, %v4030_v1 }
  0xf9   : > { %727 = vst.msk [vmem:[#allocation3 + $0x118] sm:$0x1] %vm642_vm1, %v4030_v1  ;;  %730 = vst.msk [vmem:[#allocation3 + $0x130] sm:$0x1] %vm642_vm1, %v4030_v1 }
  0xfa   : > { %728 = vst.msk [vmem:[#allocation3 + $0x120] sm:$0xff] %vm639_vm0, %v4030_v1  ;;  %729 = vst.msk [vmem:[#allocation3 + $0x128] sm:$0xff] %vm639_vm0, %v4030_v1 }
  0xfb   : > { %731 = vst.msk [vmem:[#allocation3 + $0x138] sm:$0xff] %vm639_vm0, %v4030_v1  ;;  %732 = vst.msk [vmem:[#allocation3 + $0x140] sm:$0xff] %vm639_vm0, %v4030_v1 }
  0xfc   : > { %733 = vst.msk [vmem:[#allocation3 + $0x148] sm:$0x1] %vm642_vm1, %v4030_v1  ;;  %736 = vst.msk [vmem:[#allocation3 + $0x160] sm:$0x1] %vm642_vm1, %v4030_v1 }
  0xfd   : > { %734 = vst.msk [vmem:[#allocation3 + $0x150] sm:$0xff] %vm639_vm0, %v4030_v1  ;;  %735 = vst.msk [vmem:[#allocation3 + $0x158] sm:$0xff] %vm639_vm0, %v4030_v1 }
  0xfe   : > { %737 = vst.msk [vmem:[#allocation3 + $0x168] sm:$0xff] %vm639_vm0, %v4030_v1  ;;  %738 = vst.msk [vmem:[#allocation3 + $0x170] sm:$0xff] %vm639_vm0, %v4030_v1 }
  0xff   : > { %739 = vst.msk [vmem:[#allocation3 + $0x178] sm:$0x1] %vm642_vm1, %v4030_v1  ;;  %742 = vst.msk [vmem:[#allocation3 + $0x190] sm:$0x1] %vm642_vm1, %v4030_v1 }
 0x100   : > { %740 = vst.msk [vmem:[#allocation3 + $0x180] sm:$0xff] %vm639_vm0, %v4030_v1  ;;  %741 = vst.msk [vmem:[#allocation3 + $0x188] sm:$0xff] %vm639_vm0, %v4030_v1  ;;  %v615_v1 = vmul.f32 0.25, %v585_v53 }
 0x101   : > { %748 = vst.msk [vmem:[#allocation2 + $0x39] sm:$0x7f] %vm745_vm2, %v612_v38  ;;  %746 = vst.msk [vmem:[#allocation2 + $0x21] sm:$0x7f] %vm745_vm2, %v610_v42  ;;  %v4579_v42 = vrot.slane %v4534_v7, 1 }
 0x102   : > { %747 = vst.msk [vmem:[#allocation2 + $0x31] sm:$0xff] %vm639_vm0, %v611_v48  ;;  %751 = vst.msk [vmem:[#allocation2 + $0x61] sm:$0xff] %vm639_vm0, %v615_v1  ;;  %817 = vrot.lane.b32.xlu0 %v615_v1, %s4031_s8  ;;  %v4586_v48 = vld [vmem:[%s4337_s17 + $0xb0] sm:$0xff]  ;;  %v424_v1 = vadd.f32 %v394_v46, %v4531_v6  ;;  %v427_v6 = vadd.f32 %v4602_v61, %v395_v60 }
 0x103   : > { %752 = vst.msk [vmem:[#allocation2 + $0x69] sm:$0x7f] %vm745_vm2, %v616_v49  ;;  %750 = vst.msk [vmem:[#allocation2 + $0x51] sm:$0x7f] %vm745_vm2, %v614_v2  ;;  %v618_v49 = vmul.f32 0.25, %v588_v22  ;;  %v496_v50 = vsel %vm466_vm3, %v494_v41, %v4579_v42  ;;  %v596_v63 = vadd.f32 %v559_v52, %v4579_v42  ;;  %v426_v2 = vadd.f32 %v4586_v48, %v394_v46 }
 0x104   : > { %749 = vst.msk [vmem:[#allocation2 + $0x49] sm:$0xff] %vm639_vm0, %v613_v10  ;;  %755 = vst.msk [vmem:[#allocation2 + $0x91] sm:$0xff] %vm639_vm0, %v619_v33  ;;  %v595_v62 = vadd.f32 %v558_v51, %v496_v50  ;;  %v500_v17 = vrot.slane %v4586_v48, 1  ;;  %v560_v20 = vadd.f32 %v496_v50, %v424_v1  ;;  %v563_v12 = vadd.f32 %v498_v56, %v427_v6 }
 0x105   : > { %756 = vst.msk [vmem:[#allocation2 + $0x99] sm:$0x7f] %vm745_vm2, %v620_v18  ;;  %754 = vst.msk [vmem:[#allocation2 + $0x81] sm:$0x7f] %vm745_vm2, %v618_v49  ;;  %v4616_v8 = vmul.f32 0.25, %v596_v63  ;;  %v621_v18 = vmul.f32 0.25, %v591_v9  ;;  %823 = vrot.lane.b32.xlu1 %v618_v49, %s4031_s8  ;;  %v561_v35 = vadd.f32 %v4579_v42, %v425_v21  ;;  %v429_v6 = vadd.f32 %v4626_v15, %v4602_v61 }
 0x106   : > { %813 = vrot.lane.b32.xlu0 %v613_v10, %s4031_s8  ;;  %744 = vst.msk [vmem:[#allocation2 + $0x19] sm:$0xff] %vm639_vm0, %v609_v24  ;;  %753 = vst.msk [vmem:[#allocation2 + $0x79] sm:$0xff] %vm639_vm0, %v617_v43  ;;  %v4614_v5 = vmul.f32 0.25, %v595_v62  ;;  %v497_v10 = vrot.slane %v394_v46, 1  ;;  %v4650_v7 = vsel %vm466_vm3, %v500_v17, %v4634_v19  ;;  %v600_v24 = vadd.f32 %v563_v12, %v4634_v19  ;;  %v403_v42 = vld [vmem:[%s4337_s17 + $0xe8] sm:$0xff] }
 0x107   : > { %759 = vst.msk [vmem:[#allocation2 + $0xc1] sm:$0xff] %vm639_vm0, %v4609_v58  ;;  %757 = vst.msk [vmem:[#allocation2 + $0xa9] sm:$0xff] %vm639_vm0, %v621_v18  ;;  %v598_v46 = vadd.f32 %v561_v35, %v498_v56  ;;  %v506_v49 = vrot.slane %v4638_v23, 1  ;;  %v507_v50 = vrot.slane %v4641_v25, 1  ;;  %v435_v60 = vadd.f32 %v405_v45, %v403_v42  ;;  %v2031_v45 = vld [vmem:[#allocation7 + $0xe] sm:$0x3] }
 0x108   : > { %761 = vst.msk [vmem:[#allocation2 + $0xd9] sm:$0xff] %vm639_vm0, %v4614_v5  ;;  %v499_v29 = vsel %vm466_vm3, %v497_v10, %v498_v56  ;;  %v509_v63 = vrot.slane %v402_v32, 1  ;;  %v510_v1 = vrot.slane %v403_v42, 1  ;;  %v432_v56 = vadd.f32 %v402_v32, %v4638_v23 }
 0x109   : > { %v945_v38 = vld [vmem:[#allocation2 + $0x31] ss:$2 sm:$0xff]  ;;  %762 = vst.msk [vmem:[#allocation2 + $0xe1] sm:$0x7f] %vm745_vm2, %v4616_v8  ;;  %v562_v4 = vadd.f32 %v499_v29, %v426_v2  ;;  %v597_v31 = vadd.f32 %v560_v20, %v499_v29  ;;  %760 = vst.msk [vmem:[#allocation2 + $0xc9] sm:$0x7f] %vm745_vm2, %v624_v27  ;;  %835 = vrot.lane.b32.xlu1 %v624_v27, %s4031_s8  ;;  %v565_v21 = vadd.f32 %v4634_v19, %v429_v6 }
 0x10a   : > { %3358 = vmatmul.mubr.msk.f32.vlgmr.msra.gmra.mrb[0].mxu1 %vm639_vm0, %v945_v38  ;;  %v947_v53 = vld [vmem:[#allocation2 + $0x61] ss:$2 sm:$0xff]  ;;  %825 = vrot.lane.b32.xlu0 %v619_v33, %s4031_s8  ;;  %758 = vst.msk [vmem:[#allocation2 + $0xb1] sm:$0x7f] %vm745_vm2, %v4643_v16  ;;  %v431_v38 = vadd.f32 %v4641_v25, %v4626_v15  ;;  %v628_v57 = vmul.f32 0.25, %v598_v46  ;;  %v511_v9 = vsel %vm466_vm3, %v509_v63, %v510_v1 }
 0x10b   : > { %3370 = vmatpush3.msk.msra.mxu1 %vm984_vm4, %v941_v14  ;;  %3360 = vmatprep.mubr.msk.f32.mxu1 %vm639_vm0, %v947_v53  ;;  %v4623_v14 = vld [vmem:[%s4337_s17 + $0xc0] sm:$0xff]  ;;  %v404_v33 = vld [vmem:[%s4337_s17 + $0xf0] sm:$0xff]  ;;  %v599_v41 = vadd.f32 %v562_v4, %v4650_v7  ;;  %v4683_v53 = vmul.f32 0.25, %v600_v24  ;;  %v571_v13 = vadd.f32 %v510_v1, %v435_v60  ;;  %s3944_s17 = scalar_lea.vmem %s3943_s29, 2048 }
 0x10c   : > { %3383 = vmatprep.subr.msk.mxu1 %vm984_vm4, %v4574_v39  ;;  %v949_v26 = vld [vmem:[#allocation2 + $0x91] ss:$2 sm:$0xff]  ;;  %v430_v36 = vadd.f32 %v4638_v23, %v4623_v14  ;;  %v503_v22 = vrot.slane %v4623_v14, 1  ;;  %v434_v51 = vadd.f32 %v404_v33, %v402_v32  ;;  %v567_v55 = vadd.f32 %v504_v44, %v431_v38  ;;  %764 = vst.msk [vmem:[#allocation2 + $0xf9] sm:$0x7f] %vm745_vm2, %v628_v57  ;;  %p3946_p3 = scmp.lt.s32.totalorder %s3944_s17, %s3938_s21 }
 0x10d   : > { %v1543_v28 = vld [vmem:[#allocation2 + $0x49] ss:$2 sm:$0xff]  ;;  %v1541_v30 = vld [vmem:[#allocation2 + $0x19] ss:$2 sm:$0xff]  ;;  %v4681_v52 = vmul.f32 0.25, %v599_v41  ;;  %v574_v2 = vrot.slane %v404_v33, 1  ;;  %v428_v3 = vadd.f32 %v4623_v14, %v4586_v48  ;;  %831 = vrot.lane.b32.xlu1 %v4643_v16, %s4031_s8  ;;  %v608_v20 = vadd.f32 %v575_v37, %v571_v13 }
 0x10e   : > { %3361 = vmatmul.mubr.msk.f32.gmra.mrb[2].mxu1 %vm639_vm0, %v949_v26  ;;  %821 = vrot.lane.b32.xlu0 %v617_v43, %s4031_s8  ;;  %v1545_v34 = vld [vmem:[#allocation2 + $0x79] ss:$2 sm:$0xff]  ;;  %v627_v43 = vmul.f32 0.25, %v597_v31  ;;  %v505_v54 = vsel %vm466_vm3, %v503_v22, %v504_v44  ;;  %766 = vst.msk [vmem:[#allocation2 + $0x111] sm:$0x7f] %vm745_vm2, %v4683_v53  ;;  %v604_v62 = vadd.f32 %v567_v55, %v507_v50  ;;  %p3947_p2 = por %p3946_p3, %p3945_p1 }
 0x10f   : > { %3413 = vmatprep.mubr.msk.f32.mxu0 %vm639_vm0, %v1541_v30  ;;  %v566_v59 = vadd.f32 %v505_v54, %v430_v36  ;;  %765 = vst.msk [vmem:[#allocation2 + $0x109] sm:$0xff] %vm639_vm0, %v4681_v52  ;;  %v570_v48 = vadd.f32 %v511_v9, %v434_v51  ;;  %v576_v61 = vsel %vm466_vm3, %v574_v2, %v575_v37  ;;  %v1699_v35 = vld [vmem:[#allocation2 + $0x1a] ss:$2 sm:$0xff]  ;;  %v1701_v38 = vld [vmem:[#allocation2 + $0x4a] ss:$2 sm:$0xff] }
 0x110   : > { %3414 = vmatmul.mubr.msk.f32.vlgmr.msra.gmra.mrb[0].mxu0 %vm639_vm0, %v1543_v28  ;;  %763 = vst.msk [vmem:[#allocation2 + $0xf1] sm:$0xff] %vm639_vm0, %v627_v43  ;;  %v4701_v11 = vmul.f32 0.25, %v604_v62  ;;  %v564_v14 = vadd.f32 %v4650_v7, %v428_v3  ;;  %v951_v15 = vld [vmem:[#allocation2 + $0xc1] ss:$2 sm:$0xff]  ;;  %v433_v28 = vadd.f32 %v403_v42, %v4641_v25  ;;  %v602_v16 = vadd.f32 %v565_v21, %v504_v44  ;;  %v926_v41 = vld [vmem:[#allocation2] ss:$2 sm:$0xff]  ;;  %p3948_p8 = pnand %p3947_p2, %p3941_p13 }
 0x111   : > { %3416 = vmatprep.mubr.msk.f32.mxu0 %vm639_vm0, %v1545_v34  ;;  %3426 = vmatpush3.msk.msra.mxu0 %vm984_vm4, %v4527_v0  ;;  %v508_v0 = vsel %vm466_vm3, %v506_v49, %v507_v50  ;;  %v1547_v10 = vld [vmem:[#allocation2 + $0xa9] ss:$2 sm:$0xff]  ;;  %v607_v26 = vadd.f32 %v576_v61, %v570_v48  ;;  %v1705_v24 = vld [vmem:[#allocation2 + $0xaa] ss:$2 sm:$0xff]  ;;  %v1707_v44 = vld [vmem:[#allocation2 + $0xda] ss:$2 sm:$0xff] }
 0x112   : > { %833 = vrot.lane.b32.xlu0 %v4609_v58, %s4031_s8  ;;  %3439 = vmatprep.subr.msk.mxu0 %vm984_vm4, %v4666_v40  ;;  %v1549_v58 = vld [vmem:[#allocation2 + $0xd9] ss:$2 sm:$0xff]  ;;  %v603_v47 = vadd.f32 %v566_v59, %v508_v0  ;;  %770 = vst.msk [vmem:[#allocation2 + $0x141] sm:$0x7f] %vm745_vm2, %v4701_v11  ;;  %v568_v23 = vadd.f32 %v508_v0, %v432_v56  ;;  %v632_v12 = vmul.f32 0.25, %v602_v16 }
 0x113   : > { %3363 = vmatprep.mubr.msk.f32.mxu1 %vm639_vm0, %v951_v15  ;;  %v601_v27 = vadd.f32 %v564_v14, %v505_v54  ;;  %843 = vrot.lane.b32.xlu1 %v628_v57, %s4031_s8  ;;  %v637_v19 = vmul.f32 0.25, %v607_v26  ;;  %v569_v4 = vadd.f32 %v507_v50, %v433_v28  ;;  %v930_v42 = vld [vmem:[#allocation2 + $0x60] ss:$2 sm:$0xff]  ;;  %v932_v49 = vld [vmem:[#allocation2 + $0x90] ss:$2 sm:$0xff] }
 0x114   : > { %3417 = vmatmul.mubr.msk.f32.gmra.mrb[2].mxu0 %vm639_vm0, %v1547_v10  ;;  %v4708_v17 = vmul.f32 0.25, %v603_v47  ;;  %v605_v29 = vadd.f32 %v568_v23, %v511_v9  ;;  %768 = vst.msk [vmem:[#allocation2 + $0x129] sm:$0x7f] %vm745_vm2, %v632_v12  ;;  %v1399_v51 = vld [vmem:[#allocation7 + $0x6] sm:$0x3] }
 0x115   : > { %3419 = vmatprep.mubr.msk.f32.mxu0 %vm639_vm0, %v1549_v58  ;;  %v631_v7 = vmul.f32 0.25, %v601_v27  ;;  %773 = vst.msk [vmem:[#allocation2 + $0x169] sm:$0xff] %vm639_vm0, %v637_v19  ;;  %v606_v32 = vadd.f32 %v569_v4, %v510_v1  ;;  %v1857_v54 = vld [vmem:[#allocation2 + $0x30] ss:$2 sm:$0xff]  ;;  %v2189_v60 = vld [vmem:[#allocation7 + $0x10] sm:$0x3] }
 0x116   : > { %829 = vrot.lane.b32.xlu0 %v621_v18, %s4031_s8  ;;  %769 = vst.msk [vmem:[#allocation2 + $0x139] sm:$0xff] %vm639_vm0, %v4708_v17  ;;  %v4721_v18 = vmul.f32 0.25, %v608_v20  ;;  %v1551_v30 = vld [vmem:[#allocation2 + $0x109] ss:$2 sm:$0xff]  ;;  %v635_v31 = vmul.f32 0.25, %v605_v29 }
 0x117   : > { %v953_v25 = vld [vmem:[#allocation2 + $0xf1] ss:$2 sm:$0xff]  ;;  %767 = vst.msk [vmem:[#allocation2 + $0x121] sm:$0xff] %vm639_vm0, %v631_v7  ;;  %839 = vrot.lane.b32.xlu1 %v4616_v8, %s4031_s8  ;;  %v636_v33 = vmul.f32 0.25, %v606_v32  ;;  %v1703_v8 = vld [vmem:[#allocation2 + $0x7a] ss:$2 sm:$0xff] }
 0x118   : > { %3420 = vmatmul.mubr.msk.f32.gmra.mrb[4].mxu0 %vm639_vm0, %v1551_v30  ;;  %774 = vst.msk [vmem:[#allocation2 + $0x171] sm:$0x7f] %vm745_vm2, %v4721_v18  ;;  %3364 = vmatmul.mubr.msk.f32.gmra.mrb[4].mxu1 %vm639_vm0, %v953_v25  ;;  %v1709_v46 = vld [vmem:[#allocation2 + $0x10a] ss:$2 sm:$0xff]  ;;  %v2622_v58 = vld [vmem:[#allocation12] sm:$0x3] }
 0x119   : > { %771 = vst.msk [vmem:[#allocation2 + $0x151] sm:$0xff] %vm639_vm0, %v635_v31  ;;  %v1861_v0 = vld [vmem:[#allocation2 + $0x90] ss:$2 sm:$0xff]  ;;  %v1863_v62 = vld [vmem:[#allocation2 + $0xc0] ss:$2 sm:$0xff] }
 0x11a   : > { %841 = vrot.lane.b32.xlu0 %v627_v43, %s4031_s8  ;;  %772 = vst.msk [vmem:[#allocation2 + $0x159] sm:$0x7f] %vm745_vm2, %v636_v33  ;;  %v928_v43 = vld [vmem:[#allocation2 + $0x30] ss:$2 sm:$0xff]  ;;  %v1871_v10 = vld [vmem:[#allocation2 + $0x180] ss:$2 sm:$0xff] }
 0x11b   : > { %851 = vrot.lane.b32.xlu1 %v632_v12, %s4031_s8  ;;  %v1226_v59 = vld [vmem:[#allocation2 + $0x2] ss:$2 sm:$0xff]  ;;  %v1228_v63 = vld [vmem:[#allocation2 + $0x32] ss:$2 sm:$0xff]  ;;  %v2015_v9 = vld [vmem:[#allocation2 + $0x31] ss:$2 sm:$0xff] }
 0x11c   : > { %v1865_v1 = vld [vmem:[#allocation2 + $0xf0] ss:$2 sm:$0xff]  ;;  %v2017_v56 = vld [vmem:[#allocation2 + $0x61] ss:$2 sm:$0xff]  ;;  %v2019_v48 = vld [vmem:[#allocation2 + $0x91] ss:$2 sm:$0xff] }
 0x11d   : > { %v1553_v34 = vld [vmem:[#allocation2 + $0x139] ss:$2 sm:$0xff]  ;;  %v1711_v50 = vld [vmem:[#allocation2 + $0x13a] ss:$2 sm:$0xff] }
 0x11e   : > { %837 = vrot.lane.b32.xlu0 %v4614_v5, %s4031_s8  ;;  %3422 = vmatprep.mubr.msk.f32.mxu0 %vm639_vm0, %v1553_v34  ;;  %v955_v5 = vld [vmem:[#allocation2 + $0x121] ss:$2 sm:$0xff]  ;;  %v938_v55 = vld [vmem:[#allocation2 + $0x120] ss:$2 sm:$0xff]  ;;  %v2023_v20 = vld [vmem:[#allocation2 + $0xf1] ss:$2 sm:$0xff] }
 0x11f   : > { %v1555_v36 = vld [vmem:[#allocation2 + $0x169] ss:$2 sm:$0xff]  ;;  %847 = vrot.lane.b32.xlu1 %v4683_v53, %s4031_s8  ;;  %3366 = vmatprep.mubr.msk.f32.mxu1 %vm639_vm0, %v955_v5  ;;  %v936_v53 = vld [vmem:[#allocation2 + $0xf0] ss:$2 sm:$0xff]  ;;  %v1867_v47 = vld [vmem:[#allocation2 + $0x120] ss:$2 sm:$0xff] }
 0x120   : > { %3423 = vmatmul.mubr.msk.f32.gmra.mrb[6].mxu0 %vm639_vm0, %v1555_v36  ;;  %v1230_v2 = vld [vmem:[#allocation2 + $0x62] ss:$2 sm:$0xff]  ;;  %v1232_v37 = vld [vmem:[#allocation2 + $0x92] ss:$2 sm:$0xff]  ;;  %v2021_v14 = vld [vmem:[#allocation2 + $0xc1] ss:$2 sm:$0xff] }
 0x121   : > { %3427 = vmatprep.mubr.msk.f32.mxu0 %vm639_vm0, %v1699_v35  ;;  %v957_v22 = vld [vmem:[#allocation2 + $0x151] ss:$2 sm:$0xff]  ;;  %v940_v57 = vld [vmem:[#allocation2 + $0x150] ss:$2 sm:$0xff]  ;;  %v2025_v23 = vld [vmem:[#allocation2 + $0x121] ss:$2 sm:$0xff] }
 0x122   : > { %849 = vrot.lane.b32.xlu0 %v631_v7, %s4031_s8  ;;  %3367 = vmatmul.mubr.msk.f32.gmra.mrb[6].mxu1 %vm639_vm0, %v957_v22  ;;  %v1869_v3 = vld [vmem:[#allocation2 + $0x150] ss:$2 sm:$0xff]  ;;  %v2027_v27 = vld [vmem:[#allocation2 + $0x151] ss:$2 sm:$0xff] }
 0x123   : > { %859 = vrot.lane.b32.xlu1 %v636_v33, %s4031_s8  ;;  %3371 = vmatprep.mubr.msk.f32.mxu1 %vm639_vm0, %v926_v41  ;;  %v1234_v6 = vld [vmem:[#allocation2 + $0xc2] ss:$2 sm:$0xff]  ;;  %v2173_v29 = vld [vmem:[#allocation2 + $0x32] ss:$2 sm:$0xff] }
 0x124   : > { %3428 = vmatmul.mubr.msk.f32.vlgmr.msra.gmra.mrb[0].mxu0 %vm639_vm0, %v1701_v38  ;;  %v1238_v13 = vld [vmem:[#allocation2 + $0x122] ss:$2 sm:$0xff]  ;;  %v2177_v4 = vld [vmem:[#allocation2 + $0x92] ss:$2 sm:$0xff] }
 0x125   : > { %3430 = vmatprep.mubr.msk.f32.mxu0 %vm639_vm0, %v1703_v8  ;;  %3440 = vmatpush3.msk.msra.mxu0 %vm984_vm4, %v4666_v40  ;;  %v934_v40 = vld [vmem:[#allocation2 + $0xc0] ss:$2 sm:$0xff] }
 0x126   : > { %845 = vrot.lane.b32.xlu0 %v4681_v52, %s4031_s8  ;;  %3372 = vmatmul.mubr.msk.f32.vlgmr.msra.gmra.mrb[0].mxu1 %vm639_vm0, %v928_v43  ;;  %v1713_v52 = vld [vmem:[#allocation2 + $0x16a] ss:$2 sm:$0xff] }
 0x127   : > { %855 = vrot.lane.b32.xlu1 %v4701_v11, %s4031_s8  ;;  %3374 = vmatprep.mubr.msk.f32.mxu1 %vm639_vm0, %v930_v42  ;;  %v1236_v11 = vld [vmem:[#allocation2 + $0xf2] ss:$2 sm:$0xff]  ;;  %v2179_v12 = vld [vmem:[#allocation2 + $0xc2] ss:$2 sm:$0xff]  ;;  %v2432_v42 = vld [vmem:[#allocation3 + $0x1] ss:$2 sm:$0xff] }
 0x128   : > { %3431 = vmatmul.mubr.msk.f32.gmra.mrb[2].mxu0 %vm639_vm0, %v1705_v24  ;;  %3453 = vmatprep.subr.msk.mxu0 %vm984_vm4, %v2031_v45  ;;  %v1383_v61 = vld [vmem:[#allocation2 + $0x18] ss:$2 sm:$0xff]  ;;  %v1385_v15 = vld [vmem:[#allocation2 + $0x48] ss:$2 sm:$0xff] }
 0x129   : > { %3433 = vmatprep.mubr.msk.f32.mxu0 %vm639_vm0, %v1707_v44  ;;  %3384 = vmatpush3.msk.msra.mxu1 %vm984_vm4, %v4574_v39  ;;  %v1859_v39 = vld [vmem:[#allocation2 + $0x60] ss:$2 sm:$0xff] }
 0x12a   : > { %857 = vrot.lane.b32.xlu0 %v635_v31, %s4031_s8  ;;  %3375 = vmatmul.mubr.msk.f32.gmra.mrb[2].mxu1 %vm639_vm0, %v932_v49  ;;  %v1387_v21 = vld [vmem:[#allocation2 + $0x78] ss:$2 sm:$0xff]  ;;  %v1389_v26 = vld [vmem:[#allocation2 + $0xa8] ss:$2 sm:$0xff] }
 0x12b   : > { %863 = vrot.lane.b32.xlu1 %v4721_v18, %s4031_s8  ;;  %3377 = vmatprep.mubr.msk.f32.mxu1 %vm639_vm0, %v934_v40  ;;  %v1391_v28 = vld [vmem:[#allocation2 + $0xd8] ss:$2 sm:$0xff]  ;;  %v2029_v18 = vld [vmem:[#allocation2 + $0x181] ss:$2 sm:$0xff]  ;;  %v1393_v16 = vld [vmem:[#allocation2 + $0x108] ss:$2 sm:$0xff] }
 0x12c   : > { %3434 = vmatmul.mubr.msk.f32.gmra.mrb[4].mxu0 %vm639_vm0, %v1709_v46  ;;  %3397 = vmatprep.subr.msk.mxu1 %vm984_vm4, %v1399_v51  ;;  %v1395_v30 = vld [vmem:[#allocation2 + $0x138] ss:$2 sm:$0xff]  ;;  %v1397_v7 = vld [vmem:[#allocation2 + $0x168] ss:$2 sm:$0xff] }
 0x12d   : > { %3436 = vmatprep.mubr.msk.f32.mxu0 %vm639_vm0, %v1711_v50  ;;  %v2181_v31 = vld [vmem:[#allocation2 + $0xf2] ss:$2 sm:$0xff]  ;;  %v2183_v25 = vld [vmem:[#allocation2 + $0x122] ss:$2 sm:$0xff] }
 0x12e   : > { %853 = vrot.lane.b32.xlu0 %v4708_v17, %s4031_s8  ;;  %3378 = vmatmul.mubr.msk.f32.gmra.mrb[4].mxu1 %vm639_vm0, %v936_v53  ;;  %v1240_v17 = vld [vmem:[#allocation2 + $0x152] ss:$2 sm:$0xff]  ;;  %v2187_v33 = vld [vmem:[#allocation2 + $0x182] ss:$2 sm:$0xff] }
 0x12f   : > { %3380 = vmatprep.mubr.msk.f32.mxu1 %vm639_vm0, %v938_v55  ;;  %v2185_v32 = vld [vmem:[#allocation2 + $0x152] ss:$2 sm:$0xff] }
 0x130   : > { %3437 = vmatmul.mubr.msk.f32.gmra.mrb[6].mxu0 %vm639_vm0, %v1713_v52  ;;  %v2416_v44 = vld [vmem:[#allocation3] ss:$2 sm:$0xff] }
 0x131   : > { %3441 = vmatprep.mubr.msk.f32.mxu0 %vm639_vm0, %v1857_v54  ;;  %v2447_v50 = vmax.f32 %v2416_v44, %v2432_v42 }
 0x132   : > { %861 = vrot.lane.b32.xlu0 %v637_v19, %s4031_s8  ;;  %3381 = vmatmul.mubr.msk.f32.gmra.mrb[6].mxu1 %vm639_vm0, %v940_v57  ;;  %v2175_v19 = vld [vmem:[#allocation2 + $0x62] ss:$2 sm:$0xff] }
 0x133   : > { %3385 = vmatprep.mubr.msk.f32.mxu1 %vm639_vm0, %v1226_v59 }
 0x134   : > { %3442 = vmatmul.mubr.msk.f32.vlgmr.msra.gmra.mrb[0].mxu0 %vm639_vm0, %v1859_v39 }
 0x135   : > { %3444 = vmatprep.mubr.msk.f32.mxu0 %vm639_vm0, %v1861_v0  ;;  %3454 = vmatpush3.msk.msra.mxu0 %vm984_vm4, %v2031_v45 }
 0x136   : > { %3467 = vmatprep.subr.msk.mxu0 %vm984_vm4, %v2189_v60  ;;  %3386 = vmatmul.mubr.msk.f32.vlgmr.msra.gmra.mrb[0].mxu1 %vm639_vm0, %v1228_v63 }
 0x137   : > { %3388 = vmatprep.mubr.msk.f32.mxu1 %vm639_vm0, %v1230_v2  ;;  %3398 = vmatpush3.msk.msra.mxu1 %vm984_vm4, %v1399_v51  ;;  %v2456_v51 = vld [vmem:[#allocation3 + $0x2] ss:$2 sm:$0xff] }
 0x138   : > { %3445 = vmatmul.mubr.msk.f32.gmra.mrb[2].mxu0 %vm639_vm0, %v1863_v62  ;;  %3481 = vmatprep.subr.msk.mxu1 %vm984_vm4, %v2622_v58  ;;  %v2471_v59 = vmax.f32 %v2447_v50, %v2456_v51 }
 0x139   : > { %3447 = vmatprep.mubr.msk.f32.mxu0 %vm639_vm0, %v1865_v1 }
 0x13a   : > { %3389 = vmatmul.mubr.msk.f32.gmra.mrb[2].mxu1 %vm639_vm0, %v1232_v37 }
 0x13b   : > { %3391 = vmatprep.mubr.msk.f32.mxu1 %vm639_vm0, %v1234_v6 }
 0x13c   : > { %3448 = vmatmul.mubr.msk.f32.gmra.mrb[4].mxu0 %vm639_vm0, %v1867_v47 }
 0x13d   : > { %3450 = vmatprep.mubr.msk.f32.mxu0 %vm639_vm0, %v1869_v3 }
 0x13e   : > { %3392 = vmatmul.mubr.msk.f32.gmra.mrb[4].mxu1 %vm639_vm0, %v1236_v11 }
 0x13f   : > { %3394 = vmatprep.mubr.msk.f32.mxu1 %vm639_vm0, %v1238_v13 }
 0x140   : > { %3451 = vmatmul.mubr.msk.f32.gmra.mrb[6].mxu0 %vm639_vm0, %v1871_v10 }
 0x141   : > { %3455 = vmatprep.mubr.msk.f32.mxu0 %vm639_vm0, %v2015_v9 }
 0x142   : > { %3395 = vmatmul.mubr.msk.f32.gmra.mrb[6].mxu1 %vm639_vm0, %v1240_v17 }
 0x143   : > { %3399 = vmatprep.mubr.msk.f32.mxu1 %vm639_vm0, %v1383_v61 }
 0x144   : > { %3456 = vmatmul.mubr.msk.f32.vlgmr.msra.gmra.mrb[0].mxu0 %vm639_vm0, %v2017_v56 }
 0x145   : > { %3458 = vmatprep.mubr.msk.f32.mxu0 %vm639_vm0, %v2019_v48  ;;  %3468 = vmatpush3.msk.msra.mxu0 %vm984_vm4, %v2189_v60 }
 0x146   : > { %3400 = vmatmul.mubr.msk.f32.vlgmr.msra.gmra.mrb[0].mxu1 %vm639_vm0, %v1385_v15 }
 0x147   : > { %3402 = vmatprep.mubr.msk.f32.mxu1 %vm639_vm0, %v1387_v21  ;;  %3482 = vmatpush3.msk.msra.mxu1 %vm984_vm4, %v2622_v58 }
 0x148   : > { %3459 = vmatmul.mubr.msk.f32.gmra.mrb[2].mxu0 %vm639_vm0, %v2021_v14 }
 0x149   : > { %3461 = vmatprep.mubr.msk.f32.mxu0 %vm639_vm0, %v2023_v20 }
 0x14a   : > { %3403 = vmatmul.mubr.msk.f32.gmra.mrb[2].mxu1 %vm639_vm0, %v1389_v26  ;;  %v812_v34 = vpop.permute.xlu0 %811 }
 0x14b   : > { %3405 = vmatprep.mubr.msk.f32.mxu1 %vm639_vm0, %v1391_v28  ;;  %899 = vst.msk [vmem:[#allocation3 + $0x39] sm:$0x7f] %vm745_vm2, %v812_v34  ;;  %v808_v35 = vpop.permute.xlu1 %807 }
 0x14c   : > { %3462 = vmatmul.mubr.msk.f32.gmra.mrb[4].mxu0 %vm639_vm0, %v2025_v23  ;;  %897 = vst.msk [vmem:[#allocation3 + $0x21] sm:$0x7f] %vm745_vm2, %v808_v35 }
 0x14d   : > { %3464 = vmatprep.mubr.msk.f32.mxu0 %vm639_vm0, %v2027_v27 }
 0x14e   : > { %3406 = vmatmul.mubr.msk.f32.gmra.mrb[4].mxu1 %vm639_vm0, %v1393_v16  ;;  %v810_v36 = vpop.permute.xlu0 %809 }
 0x14f   : > { %3408 = vmatprep.mubr.msk.f32.mxu1 %vm639_vm0, %v1395_v30  ;;  %898 = vst.msk [vmem:[#allocation3 + $0x31] sm:$0xff] %vm639_vm0, %v810_v36  ;;  %v820_v5 = vpop.permute.xlu1 %819 }
 0x150   : > { %3465 = vmatmul.mubr.msk.f32.gmra.mrb[6].mxu0 %vm639_vm0, %v2029_v18  ;;  %903 = vst.msk [vmem:[#allocation3 + $0x69] sm:$0x7f] %vm745_vm2, %v820_v5 }
 0x151   : > { %3469 = vmatprep.mubr.msk.f32.mxu0 %vm639_vm0, %v2173_v29 }
 0x152   : > { %3409 = vmatmul.mubr.msk.f32.gmra.mrb[6].mxu1 %vm639_vm0, %v1397_v7 }
 0x153   : > { %v816_v8 = vpop.permute.xlu1 %815 }
 0x154   : > { %3470 = vmatmul.mubr.msk.f32.vlgmr.msra.gmra.mrb[0].mxu0 %vm639_vm0, %v2175_v19  ;;  %901 = vst.msk [vmem:[#allocation3 + $0x51] sm:$0x7f] %vm745_vm2, %v816_v8 }
 0x155   : > { %3472 = vmatprep.mubr.msk.f32.mxu0 %vm639_vm0, %v2177_v4 }
 0x156   : > { %v2418_v24 = vld [vmem:[#allocation3 + $0x30] ss:$2 sm:$0xff]  ;;  %v2434_v43 = vld [vmem:[#allocation3 + $0x31] ss:$2 sm:$0xff] }
 0x157   : > { %v828_v41 = vpop.permute.xlu1 %827  ;;  %v2448_v45 = vmax.f32 %v2418_v24, %v2434_v43  ;;  %v2458_v40 = vld [vmem:[#allocation3 + $0x32] ss:$2 sm:$0xff]  ;;  %v2575_v7 = vld [vmem:[#allocation3 + $0x31] ss:$2 sm:$0xff] }
 0x158   : > { %3473 = vmatmul.mubr.msk.f32.gmra.mrb[2].mxu0 %vm639_vm0, %v2179_v12  ;;  %907 = vst.msk [vmem:[#allocation3 + $0x99] sm:$0x7f] %vm745_vm2, %v828_v41  ;;  %v2551_v26 = vld [vmem:[#allocation3 + $0x30] ss:$2 sm:$0xff] }
 0x159   : > { %3475 = vmatprep.mubr.msk.f32.mxu0 %vm639_vm0, %v2181_v31  ;;  %v2472_v52 = vmax.f32 %v2448_v45, %v2458_v40 }
 0x15b   : > { %v806_v49 = vpop.permute.xlu1 %805 }
 0x15c   : > { %3476 = vmatmul.mubr.msk.f32.gmra.mrb[4].mxu0 %vm639_vm0, %v2183_v25  ;;  %896 = vst.msk [vmem:[#allocation3 + $0x19] sm:$0xff] %vm639_vm0, %v806_v49 }
 0x15d   : > { %3478 = vmatprep.mubr.msk.f32.mxu0 %vm639_vm0, %v2185_v32  ;;  %v2599_v32 = vld [vmem:[#allocation3 + $0x32] ss:$2 sm:$0xff] }
 0x160   : > { %3479 = vmatmul.mubr.msk.f32.gmra.mrb[6].mxu0 %vm639_vm0, %v2187_v33 }
 0x163   : > { %v2479_v47 = vld [vmem:[#allocation3 + $0x18] ss:$2 sm:$0xff]  ;;  %v2503_v6 = vld [vmem:[#allocation3 + $0x19] ss:$2 sm:$0xff] }
 0x164   : > { %v2494_v3 = vmax.f32 %v2471_v59, %v2479_v47  ;;  %v2527_v13 = vld [vmem:[#allocation3 + $0x1a] ss:$2 sm:$0xff] }
 0x166   : > { %v2518_v9 = vmax.f32 %v2494_v3, %v2503_v6 }
 0x168   : > { %v2542_v21 = vmax.f32 %v2518_v9, %v2527_v13 }
 0x16a   : > { %v2566_v18 = vmax.f32 %v2542_v21, %v2551_v26 }
 0x16c   : > { %v2590_v31 = vmax.f32 %v2566_v18, %v2575_v7 }
 0x16e   : > { %v2614_v36 = vmax.f32 %v2590_v31, %v2599_v32 }
 0x170   : > { %3483 = vmatprep.mubr.msk.f32.mxu1 %vm639_vm0, %v2614_v36 }
 0x174   : > { %v818_v38 = vpop.permute.xlu0 %817 }
 0x175   : > { %902 = vst.msk [vmem:[#allocation3 + $0x61] sm:$0xff] %vm639_vm0, %v818_v38 }
 0x177   : > { %v824_v55 = vpop.permute.xlu1 %823 }
 0x178   : > { %v814_v22 = vpop.permute.xlu0 %813  ;;  %905 = vst.msk [vmem:[#allocation3 + $0x81] sm:$0x7f] %vm745_vm2, %v824_v55 }
 0x179   : > { %900 = vst.msk [vmem:[#allocation3 + $0x49] sm:$0xff] %vm639_vm0, %v814_v22 }
 0x17b   : > { %v836_v58 = vpop.permute.xlu1 %835 }
 0x17c   : > { %v826_v46 = vpop.permute.xlu0 %825  ;;  %v2420_v57 = vld [vmem:[#allocation3 + $0x60] ss:$2 sm:$0xff]  ;;  %v2436_v0 = vld [vmem:[#allocation3 + $0x61] ss:$2 sm:$0xff]  ;;  %911 = vst.msk [vmem:[#allocation3 + $0xc9] sm:$0x7f] %vm745_vm2, %v836_v58 }
 0x17d   : > { %906 = vst.msk [vmem:[#allocation3 + $0x91] sm:$0xff] %vm639_vm0, %v826_v46  ;;  %v2449_v2 = vmax.f32 %v2420_v57, %v2436_v0  ;;  %v2460_v10 = vld [vmem:[#allocation3 + $0x62] ss:$2 sm:$0xff]  ;;  %v2577_v16 = vld [vmem:[#allocation3 + $0x61] ss:$2 sm:$0xff] }
 0x17e   : > { %v2553_v56 = vld [vmem:[#allocation3 + $0x60] ss:$2 sm:$0xff] }
 0x17f   : > { %v2473_v17 = vmax.f32 %v2449_v2, %v2460_v10  ;;  %v832_v48 = vpop.permute.xlu1 %831  ;;  %v2601_v5 = vld [vmem:[#allocation3 + $0x62] ss:$2 sm:$0xff] }
 0x180   : > { %v822_v53 = vpop.permute.xlu0 %821  ;;  %v2481_v54 = vld [vmem:[#allocation3 + $0x48] ss:$2 sm:$0xff]  ;;  %v2505_v60 = vld [vmem:[#allocation3 + $0x49] ss:$2 sm:$0xff]  ;;  %909 = vst.msk [vmem:[#allocation3 + $0xb1] sm:$0x7f] %vm745_vm2, %v832_v48 }
 0x181   : > { %904 = vst.msk [vmem:[#allocation3 + $0x79] sm:$0xff] %vm639_vm0, %v822_v53  ;;  %v2495_v39 = vmax.f32 %v2472_v52, %v2481_v54  ;;  %v2529_v1 = vld [vmem:[#allocation3 + $0x4a] ss:$2 sm:$0xff] }
 0x183   : > { %v2519_v62 = vmax.f32 %v2495_v39, %v2505_v60 }
 0x184   : > { %v834_v63 = vpop.permute.xlu0 %833  ;;  %v2422_v15 = vld [vmem:[#allocation3 + $0x90] ss:$2 sm:$0xff]  ;;  %v2438_v20 = vld [vmem:[#allocation3 + $0x91] ss:$2 sm:$0xff] }
 0x185   : > { %910 = vst.msk [vmem:[#allocation3 + $0xc1] sm:$0xff] %vm639_vm0, %v834_v63  ;;  %v2543_v37 = vmax.f32 %v2519_v62, %v2529_v1  ;;  %v2450_v30 = vmax.f32 %v2422_v15, %v2438_v20  ;;  %v844_v19 = vpop.permute.xlu1 %843  ;;  %v2555_v33 = vld [vmem:[#allocation3 + $0x90] ss:$2 sm:$0xff]  ;;  %v2579_v8 = vld [vmem:[#allocation3 + $0x91] ss:$2 sm:$0xff] }
 0x186   : > { %915 = vst.msk [vmem:[#allocation3 + $0xf9] sm:$0x7f] %vm745_vm2, %v844_v19  ;;  %v2462_v34 = vld [vmem:[#allocation3 + $0x92] ss:$2 sm:$0xff] }
 0x187   : > { %v2567_v61 = vmax.f32 %v2543_v37, %v2553_v56  ;;  %v2474_v22 = vmax.f32 %v2450_v30, %v2462_v34  ;;  %v2603_v49 = vld [vmem:[#allocation3 + $0x92] ss:$2 sm:$0xff] }
 0x188   : > { %v830_v11 = vpop.permute.xlu0 %829  ;;  %v2483_v14 = vld [vmem:[#allocation3 + $0x78] ss:$2 sm:$0xff]  ;;  %v2507_v27 = vld [vmem:[#allocation3 + $0x79] ss:$2 sm:$0xff] }
 0x189   : > { %908 = vst.msk [vmem:[#allocation3 + $0xa9] sm:$0xff] %vm639_vm0, %v830_v11  ;;  %v2496_v23 = vmax.f32 %v2473_v17, %v2483_v14  ;;  %v2591_v4 = vmax.f32 %v2567_v61, %v2577_v16  ;;  %v2531_v12 = vld [vmem:[#allocation3 + $0x7a] ss:$2 sm:$0xff]  ;;  %v840_v41 = vpop.permute.xlu1 %839 }
 0x18a   : > { %913 = vst.msk [vmem:[#allocation3 + $0xe1] sm:$0x7f] %vm745_vm2, %v840_v41 }
 0x18b   : > { %v2520_v29 = vmax.f32 %v2496_v23, %v2507_v27  ;;  %v2615_v24 = vmax.f32 %v2591_v4, %v2601_v5 }
 0x18c   : > { %v842_v28 = vpop.permute.xlu0 %841  ;;  %v2424_v44 = vld [vmem:[#allocation3 + $0xc0] ss:$2 sm:$0xff]  ;;  %v2440_v42 = vld [vmem:[#allocation3 + $0xc1] ss:$2 sm:$0xff] }
 0x18d   : > { %914 = vst.msk [vmem:[#allocation3 + $0xf1] sm:$0xff] %vm639_vm0, %v842_v28  ;;  %v2544_v25 = vmax.f32 %v2520_v29, %v2531_v12  ;;  %3484 = vmatmul.mubr.msk.f32.vlgmr.msra.gmra.mrb[8].mxu1 %vm639_vm0, %v2615_v24  ;;  %v2451_v53 = vmax.f32 %v2424_v44, %v2440_v42  ;;  %v852_v54 = vpop.permute.xlu1 %851  ;;  %v2557_v57 = vld [vmem:[#allocation3 + $0xc0] ss:$2 sm:$0xff]  ;;  %v2581_v62 = vld [vmem:[#allocation3 + $0xc1] ss:$2 sm:$0xff] }
 0x18e   : > { %919 = vst.msk [vmem:[#allocation3 + $0x129] sm:$0x7f] %vm745_vm2, %v852_v54  ;;  %v2464_v0 = vld [vmem:[#allocation3 + $0xc2] ss:$2 sm:$0xff] }
 0x18f   : > { %v2568_v38 = vmax.f32 %v2544_v25, %v2555_v33  ;;  %v2475_v63 = vmax.f32 %v2451_v53, %v2464_v0  ;;  %v2605_v6 = vld [vmem:[#allocation3 + $0xc2] ss:$2 sm:$0xff] }
 0x190   : > { %v838_v35 = vpop.permute.xlu0 %837  ;;  %v2485_v43 = vld [vmem:[#allocation3 + $0xa8] ss:$2 sm:$0xff]  ;;  %v2509_v50 = vld [vmem:[#allocation3 + $0xa9] ss:$2 sm:$0xff] }
 0x191   : > { %912 = vst.msk [vmem:[#allocation3 + $0xd9] sm:$0xff] %vm639_vm0, %v838_v35  ;;  %v2592_v45 = vmax.f32 %v2568_v38, %v2579_v8  ;;  %v2497_v46 = vmax.f32 %v2474_v22, %v2485_v43  ;;  %v2533_v55 = vld [vmem:[#allocation3 + $0xaa] ss:$2 sm:$0xff]  ;;  %v848_v1 = vpop.permute.xlu1 %847 }
 0x192   : > { %917 = vst.msk [vmem:[#allocation3 + $0x111] sm:$0x7f] %vm745_vm2, %v848_v1 }
 0x193   : > { %v2616_v51 = vmax.f32 %v2592_v45, %v2603_v49  ;;  %v2521_v52 = vmax.f32 %v2497_v46, %v2509_v50 }
 0x194   : > { %v850_v40 = vpop.permute.xlu0 %849  ;;  %v2426_v58 = vld [vmem:[#allocation3 + $0xf0] ss:$2 sm:$0xff]  ;;  %v2442_v47 = vld [vmem:[#allocation3 + $0xf1] ss:$2 sm:$0xff] }
 0x195   : > { %918 = vst.msk [vmem:[#allocation3 + $0x121] sm:$0xff] %vm639_vm0, %v850_v40  ;;  %3486 = vmatprep.mubr.msk.f32.mxu1 %vm639_vm0, %v2616_v51  ;;  %v2545_v39 = vmax.f32 %v2521_v52, %v2533_v55  ;;  %v2452_v56 = vmax.f32 %v2426_v58, %v2442_v47  ;;  %v860_v17 = vpop.permute.xlu1 %859  ;;  %v2559_v14 = vld [vmem:[#allocation3 + $0xf0] ss:$2 sm:$0xff]  ;;  %v2583_v23 = vld [vmem:[#allocation3 + $0xf1] ss:$2 sm:$0xff] }
 0x196   : > { %923 = vst.msk [vmem:[#allocation3 + $0x159] sm:$0x7f] %vm745_vm2, %v860_v17  ;;  %v2466_v15 = vld [vmem:[#allocation3 + $0xf2] ss:$2 sm:$0xff]  ;;  %v2589_v47 = vld [vmem:[#allocation3 + $0x181] ss:$2 sm:$0xff] }
 0x197   : > { %v2569_v60 = vmax.f32 %v2545_v39, %v2557_v57  ;;  %v2476_v26 = vmax.f32 %v2452_v56, %v2466_v15  ;;  %v2607_v19 = vld [vmem:[#allocation3 + $0xf2] ss:$2 sm:$0xff] }
 0x198   : > { %v846_v59 = vpop.permute.xlu0 %845  ;;  %v2487_v2 = vld [vmem:[#allocation3 + $0xd8] ss:$2 sm:$0xff]  ;;  %v2511_v10 = vld [vmem:[#allocation3 + $0xd9] ss:$2 sm:$0xff] }
 0x199   : > { %916 = vst.msk [vmem:[#allocation3 + $0x109] sm:$0xff] %vm639_vm0, %v846_v59  ;;  %v2593_v37 = vmax.f32 %v2569_v60, %v2581_v62  ;;  %v2498_v3 = vmax.f32 %v2475_v63, %v2487_v2  ;;  %v2535_v48 = vld [vmem:[#allocation3 + $0xda] ss:$2 sm:$0xff]  ;;  %v856_v27 = vpop.permute.xlu1 %855 }
 0x19a   : > { %921 = vst.msk [vmem:[#allocation3 + $0x141] sm:$0x7f] %vm745_vm2, %v856_v27  ;;  %v2565_v63 = vld [vmem:[#allocation3 + $0x180] ss:$2 sm:$0xff] }
 0x19b   : > { %v2617_v9 = vmax.f32 %v2593_v37, %v2605_v6  ;;  %v2522_v13 = vmax.f32 %v2498_v3, %v2511_v10  ;;  %v2613_v6 = vld [vmem:[#allocation3 + $0x182] ss:$2 sm:$0xff] }
 0x19c   : > { %v858_v11 = vpop.permute.xlu0 %857  ;;  %v2428_v18 = vld [vmem:[#allocation3 + $0x120] ss:$2 sm:$0xff]  ;;  %v2444_v16 = vld [vmem:[#allocation3 + $0x121] ss:$2 sm:$0xff] }
 0x19d   : > { %922 = vst.msk [vmem:[#allocation3 + $0x151] sm:$0xff] %vm639_vm0, %v858_v11  ;;  %3487 = vmatmul.mubr.msk.f32.gmra.mrb[10].mxu1 %vm639_vm0, %v2617_v9  ;;  %v2546_v61 = vmax.f32 %v2522_v13, %v2535_v48  ;;  %v2453_v25 = vmax.f32 %v2428_v18, %v2444_v16  ;;  %v864_v32 = vpop.permute.xlu1 %863  ;;  %v2561_v5 = vld [vmem:[#allocation3 + $0x120] ss:$2 sm:$0xff]  ;;  %v2585_v24 = vld [vmem:[#allocation3 + $0x121] ss:$2 sm:$0xff] }
 0x19e   : > { %925 = vst.msk [vmem:[#allocation3 + $0x171] sm:$0x7f] %vm745_vm2, %v864_v32  ;;  %v2468_v38 = vld [vmem:[#allocation3 + $0x122] ss:$2 sm:$0xff] }
 0x19f   : > { %v2570_v21 = vmax.f32 %v2546_v61, %v2559_v14  ;;  %v2477_v22 = vmax.f32 %v2453_v25, %v2468_v38  ;;  %v2609_v45 = vld [vmem:[#allocation3 + $0x122] ss:$2 sm:$0xff] }
 0x1a0   : > { %v854_v20 = vpop.permute.xlu0 %853  ;;  %v2489_v28 = vld [vmem:[#allocation3 + $0x108] ss:$2 sm:$0xff]  ;;  %v2513_v7 = vld [vmem:[#allocation3 + $0x109] ss:$2 sm:$0xff] }
 0x1a1   : > { %920 = vst.msk [vmem:[#allocation3 + $0x139] sm:$0xff] %vm639_vm0, %v854_v20  ;;  %v2594_v29 = vmax.f32 %v2570_v21, %v2583_v23  ;;  %v2499_v30 = vmax.f32 %v2476_v26, %v2489_v28  ;;  %v2537_v33 = vld [vmem:[#allocation3 + $0x10a] ss:$2 sm:$0xff] }
 0x1a2   : > { %v3248_v32 = vld [vmem:[#allocation13] ss:$0 sm:$0xff] }
 0x1a3   : > { %v2618_v12 = vmax.f32 %v2594_v29, %v2607_v19  ;;  %v2523_v31 = vmax.f32 %v2499_v30, %v2513_v7 }
 0x1a4   : > { %v862_v4 = vpop.permute.xlu0 %861  ;;  %v2430_v35 = vld [vmem:[#allocation3 + $0x150] ss:$2 sm:$0xff]  ;;  %v2446_v36 = vld [vmem:[#allocation3 + $0x151] ss:$2 sm:$0xff] }
 0x1a5   : > { %924 = vst.msk [vmem:[#allocation3 + $0x169] sm:$0xff] %vm639_vm0, %v862_v4  ;;  %3489 = vmatprep.mubr.msk.f32.mxu1 %vm639_vm0, %v2618_v12  ;;  %v2547_v34 = vmax.f32 %v2523_v31, %v2537_v33  ;;  %v2454_v41 = vmax.f32 %v2430_v35, %v2446_v36  ;;  %v2470_v49 = vld [vmem:[#allocation3 + $0x152] ss:$2 sm:$0xff]  ;;  %v2587_v60 = vld [vmem:[#allocation3 + $0x151] ss:$2 sm:$0xff] }
 0x1a6   : > { %v2563_v39 = vld [vmem:[#allocation3 + $0x150] ss:$2 sm:$0xff] }
 0x1a7   : > { %v2571_v8 = vmax.f32 %v2547_v34, %v2561_v5  ;;  %v2478_v51 = vmax.f32 %v2454_v41, %v2470_v49  ;;  %v2611_v58 = vld [vmem:[#allocation3 + $0x152] ss:$2 sm:$0xff] }
 0x1a8   : > { %v2491_v43 = vld [vmem:[#allocation3 + $0x138] ss:$2 sm:$0xff]  ;;  %v2515_v46 = vld [vmem:[#allocation3 + $0x139] ss:$2 sm:$0xff]  ;;  %v3249_v34 = vld [vmem:[#allocation15] ss:$0 sm:$0xff] }
 0x1a9   : > { %v2595_v44 = vmax.f32 %v2571_v8, %v2585_v24  ;;  %v2500_v42 = vmax.f32 %v2477_v22, %v2491_v43  ;;  %v2539_v52 = vld [vmem:[#allocation3 + $0x13a] ss:$2 sm:$0xff] }
 0x1ab   : > { %v2619_v50 = vmax.f32 %v2595_v44, %v2609_v45  ;;  %v2524_v40 = vmax.f32 %v2500_v42, %v2515_v46 }
 0x1ac   : > { %v2493_v53 = vld [vmem:[#allocation3 + $0x168] ss:$2 sm:$0xff]  ;;  %v2517_v57 = vld [vmem:[#allocation3 + $0x169] ss:$2 sm:$0xff] }
 0x1ad   : > { %3490 = vmatmul.mubr.msk.f32.gmra.mrb[12].mxu1 %vm639_vm0, %v2619_v50  ;;  %v2548_v54 = vmax.f32 %v2524_v40, %v2539_v52  ;;  %v2501_v55 = vmax.f32 %v2478_v51, %v2493_v53  ;;  %v2541_v62 = vld [vmem:[#allocation3 + $0x16a] ss:$2 sm:$0xff] }
 0x1af   : > { %v2572_v0 = vmax.f32 %v2548_v54, %v2563_v39  ;;  %v2525_v59 = vmax.f32 %v2501_v55, %v2517_v57 }
 0x1b1   : > { %v2596_v1 = vmax.f32 %v2572_v0, %v2587_v60  ;;  %v2549_v2 = vmax.f32 %v2525_v59, %v2541_v62 }
 0x1b3   : > { %v2620_v37 = vmax.f32 %v2596_v1, %v2611_v58  ;;  %v2573_v3 = vmax.f32 %v2549_v2, %v2565_v63 }
 0x1b5   : > { %3492 = vmatprep.mubr.msk.f32.mxu1 %vm639_vm0, %v2620_v37  ;;  %v2597_v10 = vmax.f32 %v2573_v3, %v2589_v47 }
 0x1b7   : > { %v2621_v11 = vmax.f32 %v2597_v10, %v2613_v6 }
 0x1b9   : > { %3493 = vmatmul.mubr.msk.f32.gmra.mrb[14].mxu1 %vm639_vm0, %v2621_v11 }
 0x219   : > { %v3401_v9 = vpop.f32.mrb[0].mxu1 }
 0x21a   : > { %v1493_v13 = vpop.f32.mrb[1].mxu1 }
 0x21d   : > { %v3404_v56 = vpop.f32.mrb[2].mxu1 }
 0x21e   : > { %v1503_v17 = vpop.f32.mrb[3].mxu1 }
 0x221   : > { %v3407_v48 = vpop.f32.mrb[4].mxu1 }
 0x222   : > { %v1513_v61 = vpop.f32.mrb[5].mxu1 }
 0x225   : > { %v3410_v15 = vpop.f32.mrb[6].mxu1 }
 0x226   : > { %v1523_v23 = vpop.f32.mrb[7].mxu1 }
 0x227   : > { %v3471_v14 = vpop.f32.mrb[0].mxu0 }
 0x228   : > { %v4862_v20 = vadd.f32 %v3471_v14, %v3401_v9  ;;  %v2283_v21 = vpop.f32.mrb[1].mxu0 }
 0x229   : > { %v4864_v26 = vadd.f32 %v2283_v21, %v1493_v13 }
 0x22b   : > { %v3474_v27 = vpop.f32.mrb[2].mxu0 }
 0x22c   : > { %v4866_v28 = vadd.f32 %v3474_v27, %v3404_v56  ;;  %v2293_v18 = vpop.f32.mrb[3].mxu0 }
 0x22d   : > { %v4868_v16 = vadd.f32 %v2293_v18, %v1503_v17 }
 0x22f   : > { %v3477_v29 = vpop.f32.mrb[4].mxu0 }
 0x230   : > { %v4870_v30 = vadd.f32 %v3477_v29, %v3407_v48  ;;  %v2303_v19 = vpop.f32.mrb[5].mxu0 }
 0x231   : > { %v4872_v7 = vadd.f32 %v2303_v19, %v1513_v61 }
 0x233   : > { %v3480_v4 = vpop.f32.mrb[6].mxu0 }
 0x234   : > { %v4874_v12 = vadd.f32 %v3480_v4, %v3410_v15  ;;  %v2313_v31 = vpop.f32.mrb[7].mxu0 }
 0x235   : > { %v4876_v25 = vadd.f32 %v2313_v31, %v1523_v23 }
 0x260   : > { %v3485_v33 = vpop.f32.mrb[8].mxu1 }
 0x261   : > { %v2763_v35 = vmul.f32 %v3485_v33, %v3248_v32  ;;  %v2716_v36 = vpop.f32.mrb[9].mxu1 }
 0x262   : > { %v2762_v5 = vmul.f32 %v3248_v32, %v2716_v36 }
 0x263   : > { %v2778_v38 = vadd.f32 %v3249_v34, %v2763_v35 }
 0x264   : > { %v2777_v8 = vadd.f32 %v3249_v34, %v2762_v5 }
 0x265   : > { %v3251_v22 = vmul.f32 -1.442695, %v2778_v38 }
 0x266   : > { %v3250_v41 = vmul.f32 -1.442695, %v2777_v8 }
 0x267   : > { %3676 = vpow2.f32 %v3251_v22 }
 0x268   : > { %3678 = vpow2.f32 %v3250_v41 }
 0x270   : > { %v3488_v24 = vpop.f32.mrb[10].mxu1 }
 0x271   : > { %v2765_v43 = vmul.f32 %v3488_v24, %v3248_v32  ;;  %v2726_v44 = vpop.f32.mrb[11].mxu1  ;;  %v3677_v50 = vpop.eup %3676  ;;  %v3229_v24 = vld [vmem:[#allocation9] ss:$0 sm:$0xff] }
 0x272   : > { %v2764_v42 = vmul.f32 %v3248_v32, %v2726_v44  ;;  %v3679_v51 = vpop.eup %3678  ;;  %v2810_v52 = vadd.f32 1.0, %v3677_v50  ;;  %v3230_v44 = vld [vmem:[#allocation10] ss:$0 sm:$0xff] }
 0x273   : > { %v2780_v45 = vadd.f32 %v3249_v34, %v2765_v43  ;;  %v2809_v53 = vadd.f32 1.0, %v3679_v51  ;;  %v2338_v43 = vmul.f32 %v4862_v20, %v3229_v24  ;;  %v2339_v51 = vmul.f32 %v4868_v16, %v3229_v24 }
 0x274   : > { %v2779_v46 = vadd.f32 %v3249_v34, %v2764_v42  ;;  %v2337_v42 = vmul.f32 %v4864_v26, %v3229_v24 }
 0x275   : > { %v3253_v49 = vmul.f32 -1.442695, %v2780_v45 }
 0x276   : > { %v3252_v40 = vmul.f32 -1.442695, %v2779_v46 }
 0x277   : > { %3680 = vpow2.f32 %v3253_v49 }
 0x278   : > { %3682 = vpow2.f32 %v3252_v40  ;;  %v2340_v40 = vmul.f32 %v4866_v28, %v3229_v24 }
 0x279   : > { %3684 = vrcp.f32 %v2810_v52 }
 0x27a   : > { %3686 = vrcp.f32 %v2809_v53  ;;  %v2355_v52 = vadd.f32 %v3230_v44, %v2340_v40  ;;  %v2354_v53 = vadd.f32 %v3230_v44, %v2339_v51 }
 0x280   : > { %v3491_v54 = vpop.f32.mrb[12].mxu1 }
 0x281   : > { %v3681_v55 = vpop.eup %3680  ;;  %v2767_v39 = vmul.f32 %v3491_v54, %v3248_v32  ;;  %v2736_v57 = vpop.f32.mrb[13].mxu1  ;;  %v3234_v54 = vmul.f32 -1.442695, %v2355_v52 }
 0x282   : > { %v3683_v0 = vpop.eup %3682  ;;  %v2812_v59 = vadd.f32 1.0, %v3681_v55  ;;  %v2766_v60 = vmul.f32 %v3248_v32, %v2736_v57  ;;  %v3233_v55 = vmul.f32 -1.442695, %v2354_v53 }
 0x283   : > { %v3685_v62 = vpop.eup %3684  ;;  %v2811_v63 = vadd.f32 1.0, %v3683_v0  ;;  %v2782_v1 = vadd.f32 %v3249_v34, %v2767_v39  ;;  %v2342_v0 = vmul.f32 %v4870_v30, %v3229_v24 }
 0x284   : > { %v3687_v2 = vpop.eup %3686  ;;  %3688 = vrcp.f32 %v2812_v59  ;;  %v2781_v58 = vadd.f32 %v3249_v34, %v2766_v60  ;;  %v2834_v47 = vmul.f32 %v3685_v62, %v2778_v38  ;;  %v2341_v59 = vmul.f32 %v4872_v7, %v3229_v24 }
 0x285   : > { %3690 = vrcp.f32 %v2811_v63  ;;  %v3255_v37 = vmul.f32 -1.442695, %v2782_v1  ;;  %v2833_v3 = vmul.f32 %v3687_v2, %v2777_v8  ;;  %v2357_v28 = vadd.f32 %v3230_v44, %v2342_v0 }
 0x286   : > { %v3254_v6 = vmul.f32 -1.442695, %v2781_v58  ;;  %2851 = vrot.lane.b32.xlu1 %v2834_v47, %s4032_s20  ;;  %v2356_v16 = vadd.f32 %v3230_v44, %v2341_v59  ;;  %v2343_v7 = vmul.f32 %v4876_v25, %v3229_v24 }
 0x287   : > { %3692 = vpow2.f32 %v3255_v37  ;;  %2849 = vrot.lane.b32.xlu0 %v2833_v3, %s4032_s20  ;;  %v3236_v63 = vmul.f32 -1.442695, %v2357_v28  ;;  %v2344_v37 = vmul.f32 %v4874_v12, %v3229_v24 }
 0x288   : > { %3694 = vpow2.f32 %v3254_v6 }
 0x289   : > { %v2359_v6 = vadd.f32 %v3230_v44, %v2344_v37 }
 0x28b   : > { %v3238_v25 = vmul.f32 -1.442695, %v2359_v6 }
 0x28c   : > { %v3494_v10 = vpop.f32.mrb[14].mxu1 }
 0x28d   : > { %v2769_v11 = vmul.f32 %v3494_v10, %v3248_v32  ;;  %v2746_v9 = vpop.f32.mrb[15].mxu1 }
 0x28e   : > { %v3689_v13 = vpop.eup %3688  ;;  %v2768_v56 = vmul.f32 %v3248_v32, %v2746_v9 }
 0x28f   : > { %v3691_v17 = vpop.eup %3690  ;;  %v2784_v48 = vadd.f32 %v3249_v34, %v2769_v11  ;;  %v2836_v61 = vmul.f32 %v3689_v13, %v2780_v45  ;;  %v2353_v45 = vadd.f32 %v3230_v44, %v2338_v43 }
 0x290   : > { %v2783_v14 = vadd.f32 %v3249_v34, %v2768_v56  ;;  %v2835_v15 = vmul.f32 %v3691_v17, %v2779_v46  ;;  %v2352_v46 = vadd.f32 %v3230_v44, %v2337_v42  ;;  %v2358_v56 = vadd.f32 %v3230_v44, %v2343_v7 }
 0x291   : > { %v3693_v21 = vpop.eup %3692  ;;  %v3257_v23 = vmul.f32 -1.442695, %v2784_v48  ;;  %2855 = vrot.lane.b32.xlu1 %v2836_v61, %s4032_s20  ;;  %v3232_v49 = vmul.f32 -1.442695, %v2353_v45 }
 0x292   : > { %v3695_v27 = vpop.eup %3694  ;;  %v2814_v18 = vadd.f32 1.0, %v3693_v21  ;;  %v3256_v29 = vmul.f32 -1.442695, %v2783_v14  ;;  %2853 = vrot.lane.b32.xlu0 %v2835_v15, %s4032_s20  ;;  %v3231_v50 = vmul.f32 -1.442695, %v2352_v46 }
 0x293   : > { %v2813_v19 = vadd.f32 1.0, %v3695_v27  ;;  %3696 = vpow2.f32 %v3257_v23 }
 0x294   : > { %3698 = vrcp.f32 %v2814_v18 }
 0x295   : > { %3700 = vrcp.f32 %v2813_v19 }
 0x296   : > { %3702 = vpow2.f32 %v3256_v29 }
 0x29d   : > { %v3697_v4 = vpop.eup %3696 }
 0x29e   : > { %v3699_v31 = vpop.eup %3698  ;;  %v2816_v32 = vadd.f32 1.0, %v3697_v4 }
 0x29f   : > { %v3701_v33 = vpop.eup %3700  ;;  %v2838_v34 = vmul.f32 %v3699_v31, %v2782_v1  ;;  %v3235_v1 = vmul.f32 -1.442695, %v2356_v16 }
 0x2a0   : > { %v3703_v35 = vpop.eup %3702  ;;  %3704 = vrcp.f32 %v2816_v32  ;;  %v2837_v36 = vmul.f32 %v3701_v33, %v2781_v58 }
 0x2a1   : > { %v2815_v5 = vadd.f32 1.0, %v3703_v35  ;;  %2859 = vrot.lane.b32.xlu1 %v2838_v34, %s4032_s20 }
 0x2a2   : > { %2857 = vrot.lane.b32.xlu0 %v2837_v36, %s4032_s20 }
 0x2a3   : > { %3706 = vrcp.f32 %v2815_v5 }
 0x2a4   : > { %3708 = vpow2.f32 %v3232_v49 }
 0x2a5   : > { %3710 = vpow2.f32 %v3231_v50 }
 0x2a6   : > { %3712 = vpow2.f32 %v3234_v54 }
 0x2a7   : > { %3714 = vpow2.f32 %v3233_v55 }
 0x2aa   : > { %v3705_v38 = vpop.eup %3704 }
 0x2ab   : > { %v2840_v8 = vmul.f32 %v3705_v38, %v2784_v48 }
 0x2ad   : > { %v3707_v22 = vpop.eup %3706  ;;  %2863 = vrot.lane.b32.xlu1 %v2840_v8, %s4032_s20 }
 0x2ae   : > { %v2839_v41 = vmul.f32 %v3707_v22, %v2783_v14  ;;  %v3709_v39 = vpop.eup %3708  ;;  %v3237_v14 = vmul.f32 -1.442695, %v2358_v56 }
 0x2af   : > { %v3711_v57 = vpop.eup %3710  ;;  %v2385_v20 = vadd.f32 1.0, %v3709_v39 }
 0x2b0   : > { %2861 = vrot.lane.b32.xlu0 %v2839_v41, %s4032_s20  ;;  %v2384_v26 = vadd.f32 1.0, %v3711_v57  ;;  %v3713_v60 = vpop.eup %3712 }
 0x2b1   : > { %3716 = vrcp.f32 %v2385_v20  ;;  %v3715_v62 = vpop.eup %3714  ;;  %v2387_v2 = vadd.f32 1.0, %v3713_v60 }
 0x2b2   : > { %3718 = vrcp.f32 %v2384_v26  ;;  %v2386_v58 = vadd.f32 1.0, %v3715_v62 }
 0x2b3   : > { %3720 = vpow2.f32 %v3236_v63 }
 0x2b4   : > { %3722 = vpow2.f32 %v3235_v1 }
 0x2b5   : > { %3724 = vrcp.f32 %v2387_v2 }
 0x2b6   : > { %3726 = vrcp.f32 %v2386_v58 }
 0x2b7   : > { %3728 = vpow2.f32 %v3238_v25 }
 0x2b8   : > { %3730 = vpow2.f32 %v3237_v14 }
 0x2bb   : > { %v3717_v47 = vpop.eup %3716 }
 0x2bc   : > { %v3719_v30 = vpop.eup %3718  ;;  %v2409_v3 = vmul.f32 %v3717_v47, %v2353_v45 }
 0x2bd   : > { %v2408_v11 = vmul.f32 %v3719_v30, %v2352_v46  ;;  %v3721_v17 = vpop.eup %3720 }
 0x2be   : > { %v3723_v48 = vpop.eup %3722  ;;  %v2389_v21 = vadd.f32 1.0, %v3721_v17 }
 0x2bf   : > { %v3725_v61 = vpop.eup %3724  ;;  %v2388_v23 = vadd.f32 1.0, %v3723_v48 }
 0x2c0   : > { %v3727_v15 = vpop.eup %3726  ;;  %v2411_v27 = vmul.f32 %v3725_v61, %v2355_v52  ;;  %3732 = vrcp.f32 %v2389_v21 }
 0x2c1   : > { %v2410_v29 = vmul.f32 %v3727_v15, %v2354_v53  ;;  %3734 = vrcp.f32 %v2388_v23  ;;  %v3729_v32 = vpop.eup %3728 }
 0x2c2   : > { %v3731_v33 = vpop.eup %3730  ;;  %v2391_v34 = vadd.f32 1.0, %v3729_v32 }
 0x2c3   : > { %v2390_v5 = vadd.f32 1.0, %v3731_v33 }
 0x2c4   : > { %3736 = vrcp.f32 %v2391_v34 }
 0x2c5   : > { %3738 = vrcp.f32 %v2390_v5 }
 0x2ca   : > { %v3733_v35 = vpop.eup %3732 }
 0x2cb   : > { %v3735_v36 = vpop.eup %3734  ;;  %v2413_v38 = vmul.f32 %v3733_v35, %v2357_v28 }
 0x2cc   : > { %v2412_v22 = vmul.f32 %v3735_v36, %v2356_v16 }
 0x2ce   : > { %v3737_v44 = vpop.eup %3736 }
 0x2cf   : > { %v3739_v42 = vpop.eup %3738  ;;  %v2415_v45 = vmul.f32 %v3737_v44, %v2359_v6 }
 0x2d0   : > { %v2414_v50 = vmul.f32 %v3739_v42, %v2358_v56 }
 0x2f8   : > { %v2852_v10 = vpop.permute.xlu1 %2851 }
 0x2f9   : > { %v2875_v9 = vsel %vm2873_vm5, %v2409_v3, %v2852_v10  ;;  %v2850_v13 = vpop.permute.xlu0 %2849 }
 0x2fa   : > { %2884 = vst.msk [vmem:[%s4896_s18 + $0x8] sm:$0xff] %vm2882_vm6, %v2875_v9  ;;  %v2874_v12 = vsel %vm2873_vm5, %v2408_v11, %v2850_v13 }
 0x2fb   : > { %2883 = vst.msk [vmem:[%s4896_s18] sm:$0xff] %vm2882_vm6, %v2874_v12 }
 0x303   : > { %v2856_v18 = vpop.permute.xlu1 %2855 }
 0x304   : > { %v2877_v19 = vsel %vm2873_vm5, %v2411_v27, %v2856_v18  ;;  %v2854_v4 = vpop.permute.xlu0 %2853 }
 0x305   : > { %2886 = vst.msk [vmem:[%s4896_s18 + $0x18] sm:$0xff] %vm2882_vm6, %v2877_v19  ;;  %v2876_v31 = vsel %vm2873_vm5, %v2410_v29, %v2854_v4 }
 0x306   : > { %2885 = vst.msk [vmem:[%s4896_s18 + $0x10] sm:$0xff] %vm2882_vm6, %v2876_v31 }
 0x313   : > { %v2860_v8 = vpop.permute.xlu1 %2859 }
 0x314   : > { %v2879_v41 = vsel %vm2873_vm5, %v2413_v38, %v2860_v8  ;;  %v2858_v24 = vpop.permute.xlu0 %2857 }
 0x315   : > { %2888 = vst.msk [vmem:[%s4896_s18 + $0x28] sm:$0xff] %vm2882_vm6, %v2879_v41  ;;  %v2878_v43 = vsel %vm2873_vm5, %v2412_v22, %v2858_v24 }
 0x316   : > { %2887 = vst.msk [vmem:[%s4896_s18 + $0x20] sm:$0xff] %vm2882_vm6, %v2878_v43 }
 0x31f   : > { %v2864_v46 = vpop.permute.xlu1 %2863 }
 0x320   : > { %v2881_v49 = vsel %vm2873_vm5, %v2415_v45, %v2864_v46 }
 0x321   : > { %2890 = vst.msk [vmem:[%s4896_s18 + $0x38] sm:$0xff] %vm2882_vm6, %v2881_v49 }
 0x322   : > { %v2862_v40 = vpop.permute.xlu0 %2861 }
 0x323   : > { %v2880_v51 = vsel %vm2873_vm5, %v2414_v50, %v2862_v40 }
 0x324   : > { %2889 = vst.msk [vmem:[%s4896_s18 + $0x30] sm:$0xff] %vm2882_vm6, %v2880_v51 }
 0x325   : > { %3951 = shalt.err (!%p3948_p8)
}
 0x326   : > { %s3952_s8 = scalar_lea.hbm %s4925_s10, 1024  ;;  %s3956_s18 = scalar_lea.hbm %s4979_s7, 2048 }
 0x327   : > { %p3953_p4 = scmp.ne.s32.totalorder %s4925_s10, %s3952_s8  ;;  %p3957_p0 = scmp.lt.u32.totalorder %s4925_s10, %s4979_s7 }
 0x328   : > { %p3958_p5 = scmp.lt.u32.totalorder %s3956_s18, %s3952_s8  ;;  %p3960_p6 = scmp.lt.u32.totalorder %s3952_s8, %s4925_s10 }
 0x329   : > { %p3954_p10 = pnand %p3953_p4, %p4999_p9 }
 0x32a   : > { %p3959_p7 = por %p3958_p5, %p3957_p0 }
 0x32b   : > { %p3955_p11 = pneg %p3954_p10 }
 0x32c   : > { %p3961_p12 = por %p3960_p6, %p3959_p7 }
 0x32e   : > { %p3962_p13 = pnand %p3961_p12, %p3955_p11 }
 0x330   : > { %3965 = shalt.err (!%p3962_p13)
}
 0x331   : > { %s4034_s14 = smov 128   ;;  %s4035_s21 = smov 8  }
 0x332   : > { %3585 = dma.vmem_to_hbm [thread:$0]  (%p4999_p9), %s4917_s19, 1024, %s4925_s10, %s2892_s30, %s4034_s14, %s4034_s14, %s4035_s21  }
 0x333 PF: > { %s2920_s9 = sand.u32 1, %s4004_s24   ;;  %p5000_p1 = scmp.ne.s32.totalorder %s4990_s28, 0 }
 0x334   : > { %p5001_p3 = scmp.ge.s32.totalorder %s4016_s27, 2  ;;  %s2921_s29 = scalar_lea.sflag [#allocation6], %s2920_s9 }
 0x336   : > { %p3611_p2 = pnand %p5001_p3, %p5000_p1 }
 0x338   : > { %3999 = dma.done.wait (!%p3611_p2), %s2921_s29, 1024  }
 0x339   : > { %4001 = vsyncadd (!%p3611_p2), %s2921_s29, 4294966272  ;;  %p23_p8 = scmp.ge.s32.totalorder %s4254_s11, 4   ;;  %s5002_s24 = smov %s4008_s25 }
 0x33a   : > { %s5003_s25 = smov %s4012_s26  ;;  %s5004_s26 = smov %s4265_s13 }
 0x33b   : > { %s5005_s27 = smov %s4254_s11  ;;  %25 = sbr.rel (!%p23_p8) target bundleno = 8 (0x8), region = 267 }
 0x342   :  { %2926 = vsyncpa [#allocation5], 1 }
 0x343   :  { %2928 = vsyncpa [#allocation5 + $0x1], 1 }
 0x344   :  { %2929 = vsyncpa [#allocation8], 1 }
 0x345   :  { %2930 = vsyncpa [#allocation11], 1 }
 0x346   :  { %2931 = vsyncpa [#allocation14], 1 }
 0x347   :  { %2932 = vsyncpa [#allocation6], 1 }
 0x348   :  { %2934 = vsyncpa [#allocation6 + $0x1], 1 }

</bundles_post_ra>
